<compile_context>
chip_gen: v7x
topology: tpu7x:2x2x1
jax: 0.10.0
libtpu: 0.0.40
codegen_flags: <defaults>
</compile_context>

<pallas_src>
import math
import jax
import jax.numpy as jnp
from jax.experimental import pallas as pl
from jax.experimental.pallas import tpu as pltpu

N_NODES = 64
NUM_FEATURES = 128   # packed GIN weights assume NUM_FEATURES == HIDDEN_DIM
HIDDEN_DIM = 128
N_CLASSES = 4
N_EDGES = 256


def _deep_graph_conv_kernel(
    edge_ref, x_ref,
    ginw_ref, ginb_ref,            # stacked GIN MLP weights (6,H,H) bf16 / biases (6,1,H) f32
    wab_ref, bab_ref,              # fused gated-attention projection (H,2H) bf16 / (1,2H) f32
    wc_ref, bc_ref,                # attention head, PyTorch row layout (1,H) / (1,1)
    wr_ref, br_ref, wcls_ref, bcls_ref,
    hs_ref, yhat_ref, att_ref,
):
    N = x_ref.shape[0]
    H = wab_ref.shape[0]
    C = wcls_ref.shape[1]

    # ---- Dense adjacency built in-kernel: one-hot compares + MXU matmul ----
    # adj[i, j] = #edges (src=j -> dst=i); duplicate edges counted (PyG sum
    # aggregation).  +I folds in the GIN(eps=0) self term.  Counts <= E are
    # exact in bf16.
    ei = edge_ref[...]                                            # (2, E) int32
    node_iota = jax.lax.broadcasted_iota(jnp.int32, (N, ei.shape[1]), 0)
    src_oh = (node_iota == ei[0:1, :]).astype(jnp.bfloat16)       # (N, E)
    dst_oh = (node_iota == ei[1:2, :]).astype(jnp.bfloat16)       # (N, E)
    adj = jax.lax.dot_general(
        dst_oh, src_oh, (((1,), (1,)), ((), ())),
        preferred_element_type=jnp.float32)                       # (N, N)
    eye = (jax.lax.broadcasted_iota(jnp.int32, (N, N), 0)
           == jax.lax.broadcasted_iota(jnp.int32, (N, N), 1)).astype(jnp.float32)
    adj = (adj + eye).astype(jnp.bfloat16)                        # (A + I)

    x = x_ref[...]                                                # (N, F) f32

    def gin(h, layer):
        # GINConv (eps=0): nn((A + I) @ h), nn = Lin -> ReLU -> Lin; outer F.relu fused.
        agg = jnp.dot(adj, h.astype(jnp.bfloat16),
                      preferred_element_type=jnp.float32)
        z = jnp.dot(agg.astype(jnp.bfloat16), ginw_ref[2 * layer],
                    preferred_element_type=jnp.float32) + ginb_ref[2 * layer]
        z = jnp.maximum(z, 0.0)
        z = jnp.dot(z.astype(jnp.bfloat16), ginw_ref[2 * layer + 1],
                    preferred_element_type=jnp.float32) + ginb_ref[2 * layer + 1]
        return jnp.maximum(z, 0.0)

    x1 = gin(x, 0)
    x2 = gin(x1, 1)
    x3 = gin(x2, 2)                                               # (N, H) f32

    # Attn_Net_Gated with fused a|b projection -> one lane-dense (N, 2H) matmul.
    ab = jnp.dot(x3.astype(jnp.bfloat16), wab_ref[...],
                 preferred_element_type=jnp.float32) + bab_ref[...]
    gated = jnp.tanh(ab[:, :H]) * jax.nn.sigmoid(ab[:, H:])       # (N, H) f32

    # Attention scores, lane-dense (1, N): contract hidden dims of wc (1,H) with gated (N,H).
    att = jax.lax.dot_general(
        wc_ref[...], gated, (((1,), (1,)), ((), ())),
        preferred_element_type=jnp.float32) + bc_ref[...]         # (1, N)
    att_ref[...] = att             # == A_path (raw, pre-softmax)

    # Softmax along the lane axis, then attention pooling as a tiny MXU matmul.
    m = jnp.max(att, axis=1, keepdims=True)
    e = jnp.exp(att - m)
    w_row = e * pl.reciprocal(jnp.sum(e, axis=1, keepdims=True), approx=False)  # (1, N)
    h_pool = jnp.dot(w_row, x3, preferred_element_type=jnp.float32)             # (1, H)

    # path_rho: Linear -> ReLU
    hr = jnp.maximum(
        jnp.dot(h_pool, wr_ref[...], preferred_element_type=jnp.float32) + br_ref[...],
        0.0)

    # classifier
    logits = jnp.dot(hr, wcls_ref[...], preferred_element_type=jnp.float32) + bcls_ref[...]
    hazards = jax.nn.sigmoid(logits)                              # (1, C)

    # S = cumprod(1 - hazards, dim=1): unrolled, packed with hazards into ONE store.
    q = 1.0 - hazards
    run = jnp.ones((1, 1), jnp.float32)
    segs = []
    for c in range(C):
        run = run * q[:, c:c + 1]
        segs.append(run)
    s = jnp.concatenate(segs, axis=1)                             # (1, C)
    hs_ref[...] = jnp.concatenate([hazards, s], axis=0)           # (2, C), single store

    # Y_hat = torch.topk(logits, 1, dim=1)[1] == argmax (first max on ties)
    iota = jax.lax.broadcasted_iota(jnp.int32, (1, C), 1)
    maxv = jnp.max(logits, axis=1, keepdims=True)
    yhat_ref[...] = jnp.min(
        jnp.where(logits == maxv, iota, C), axis=1, keepdims=True)


def deep_graph_conv_surv(x, edge_index, params):
    """Runs the full forward pass in one Pallas kernel invocation."""
    N = x.shape[0]
    C = params["wcls"].shape[1]

    args = (
        edge_index.astype(jnp.int32),       # (2, E), adjacency built in-kernel
        x.astype(jnp.float32),
        params["gin_w"], params["gin_b"],
        params["wab"], params["bab"],
        params["wc"], params["bc"],
        params["wr"], params["br"],
        params["wcls"], params["bcls"],
    )

    vmem = pl.BlockSpec(memory_space=pltpu.MemorySpace.VMEM)
    hs, y_hat, att = pl.pallas_call(
        _deep_graph_conv_kernel,
        out_shape=(
            jax.ShapeDtypeStruct((2, C), jnp.float32),   # row 0 = hazards, row 1 = S
            jax.ShapeDtypeStruct((1, 1), jnp.int32),     # Y_hat
            jax.ShapeDtypeStruct((1, N), jnp.float32),   # A_path (raw attention, (1, N))
        ),
        in_specs=[vmem] * len(args),
        out_specs=(vmem, vmem, vmem),
    )(*args)

    hazards = hs[0:1]
    S = hs[1:2]
    A_path = att                     # already (1, N) == torch.transpose(A, 1, 0)
    return hazards, S, y_hat, A_path, None


def _linear_init(key, fan_in, fan_out):
    """PyTorch nn.Linear default init, weight stored as (in, out)."""
    kw, kb = jax.random.split(key)
    bound = 1.0 / math.sqrt(fan_in)
    w = jax.random.uniform(kw, (fan_in, fan_out), jnp.float32, -bound, bound)
    b = jax.random.uniform(kb, (1, fan_out), jnp.float32, -bound, bound)
    return w, b


def init_params(key, num_features=NUM_FEATURES, hidden_dim=HIDDEN_DIM,
                n_classes=N_CLASSES):
    assert num_features == hidden_dim, "packed GIN weights assume equal dims"
    keys = jax.random.split(key, 12)
    # conv1/2/3 MLPs (Linear -> ReLU -> Linear)
    w1a, b1a = _linear_init(keys[0], num_features, hidden_dim)
    w1b, b1b = _linear_init(keys[1], hidden_dim, hidden_dim)
    w2a, b2a = _linear_init(keys[2], hidden_dim, hidden_dim)
    w2b, b2b = _linear_init(keys[3], hidden_dim, hidden_dim)
    w3a, b3a = _linear_init(keys[4], hidden_dim, hidden_dim)
    w3b, b3b = _linear_init(keys[5], hidden_dim, hidden_dim)
    # Attn_Net_Gated
    wa, ba = _linear_init(keys[6], hidden_dim, hidden_dim)
    wb, bb = _linear_init(keys[7], hidden_dim, hidden_dim)
    wc, bc = _linear_init(keys[8], hidden_dim, 1)
    # path_rho / classifier
    wr, br = _linear_init(keys[9], hidden_dim, hidden_dim)
    wcls, bcls = _linear_init(keys[10], hidden_dim, n_classes)

    return {
        # stacked GIN MLP weights (bf16 MXU feed) and biases (f32)
        "gin_w": jnp.stack([w1a, w1b, w2a, w2b, w3a, w3b]).astype(jnp.bfloat16),  # (6,H,H)
        "gin_b": jnp.stack([b1a, b1b, b2a, b2b, b3a, b3b]),                        # (6,1,H)
        # fused gated-attention projection
        "wab": jnp.concatenate([wa, wb], axis=1).astype(jnp.bfloat16),             # (H,2H)
        "bab": jnp.concatenate([ba, bb], axis=1),                                  # (1,2H)
        # attention head (PyTorch row layout), rho, classifier
        "wc": wc.T,                                                                # (1,H)
        "bc": bc.reshape(1, 1),                                                    # (1,1)
        "wr": wr, "br": br,                                                        # (H,H)/(1,H)
        "wcls": wcls, "bcls": bcls,                                                # (H,C)/(1,C)
    }


if __name__ == "__main__":
    key = jax.random.PRNGKey(0)
    k_x, k_src, k_dst, k_p = jax.random.split(key, 4)

    x = jax.random.normal(k_x, (N_NODES, NUM_FEATURES), jnp.float32)
    src = jax.random.randint(k_src, (N_EDGES,), 0, N_NODES, jnp.int32)
    dst = jax.random.randint(k_dst, (N_EDGES,), 0, N_NODES, jnp.int32)
    edge_index = jnp.stack([src, dst], axis=0)   # (2, E), data.edge_latent

    params = init_params(k_p)

    hazards, S, Y_hat, A_path, _ = deep_graph_conv_surv(x, edge_index, params)
    jax.block_until_ready((hazards, S, Y_hat, A_path))

    assert hazards.shape == (1, N_CLASSES)
    assert S.shape == (1, N_CLASSES)
    assert Y_hat.shape == (1, 1)
    assert A_path.shape == (1, N_NODES)
    print("KERNEL_OK")
</pallas_src>

<mosaic_0001>
module attributes {stable_mosaic.version = 11 : i64} {
  func.func @_deep_graph_conv_kernel(%arg0: memref<2x256xi32, #tpu.memory_space<vmem>>, %arg1: memref<64x128xf32, #tpu.memory_space<vmem>>, %arg2: memref<6x128x128xbf16, #tpu.memory_space<vmem>>, %arg3: memref<6x1x128xf32, #tpu.memory_space<vmem>>, %arg4: memref<128x256xbf16, #tpu.memory_space<vmem>>, %arg5: memref<1x256xf32, #tpu.memory_space<vmem>>, %arg6: memref<1x128xf32, #tpu.memory_space<vmem>>, %arg7: memref<1x1xf32, #tpu.memory_space<vmem>>, %arg8: memref<128x128xf32, #tpu.memory_space<vmem>>, %arg9: memref<1x128xf32, #tpu.memory_space<vmem>>, %arg10: memref<128x4xf32, #tpu.memory_space<vmem>>, %arg11: memref<1x4xf32, #tpu.memory_space<vmem>>, %arg12: memref<2x4xf32, #tpu.memory_space<vmem>>, %arg13: memref<1x1xi32, #tpu.memory_space<vmem>>, %arg14: memref<1x64xf32, #tpu.memory_space<vmem>>) attributes {dimension_semantics = [], scalar_prefetch = 0 : i64, scratch_operands = 0 : i64, tpu.core_type = #tpu.core_type<tc>} {
    %c0 = arith.constant 0 : index
    %c0_0 = arith.constant 0 : index
    %0 = vector.load %arg0[%c0, %c0_0] : memref<2x256xi32, #tpu.memory_space<vmem>>, vector<2x256xi32>
    %1 = tpu.iota {dimensions = array<i32: 0>} : vector<64x256xi32>
    %2 = vector.extract_strided_slice %0 {offsets = [0, 0], sizes = [1, 256], strides = [1, 1]} : vector<2x256xi32> to vector<1x256xi32>
    %3 = vector.broadcast %2 : vector<1x256xi32> to vector<64x256xi32>
    %4 = arith.cmpi eq, %1, %3 : vector<64x256xi32>
    %5 = arith.extui %4 : vector<64x256xi1> to vector<64x256xi32>
    %6 = arith.sitofp %5 : vector<64x256xi32> to vector<64x256xf32>
    %7 = arith.truncf %6 : vector<64x256xf32> to vector<64x256xbf16>
    %8 = vector.extract_strided_slice %0 {offsets = [1, 0], sizes = [1, 256], strides = [1, 1]} : vector<2x256xi32> to vector<1x256xi32>
    %9 = vector.broadcast %8 : vector<1x256xi32> to vector<64x256xi32>
    %10 = arith.cmpi eq, %1, %9 : vector<64x256xi32>
    %11 = arith.extui %10 : vector<64x256xi1> to vector<64x256xi32>
    %12 = arith.sitofp %11 : vector<64x256xi32> to vector<64x256xf32>
    %13 = arith.truncf %12 : vector<64x256xf32> to vector<64x256xbf16>
    %cst = arith.constant dense<0.000000e+00> : vector<64x64xf32>
    %14 = tpu.matmul %13, %7, %cst {dimension_numbers = #tpu.dot_dimension_numbers<[1], [1], [0], [0], [0, 0, 1, 0], [], []>} : vector<64x256xbf16>, vector<64x256xbf16>, vector<64x64xf32> -> vector<64x64xf32>
    %15 = tpu.iota {dimensions = array<i32: 0>} : vector<64x64xi32>
    %16 = tpu.iota {dimensions = array<i32: 1>} : vector<64x64xi32>
    %17 = arith.cmpi eq, %15, %16 : vector<64x64xi32>
    %18 = arith.extui %17 : vector<64x64xi1> to vector<64x64xi32>
    %19 = arith.sitofp %18 : vector<64x64xi32> to vector<64x64xf32>
    %20 = arith.addf %14, %19 : vector<64x64xf32>
    %21 = arith.truncf %20 : vector<64x64xf32> to vector<64x64xbf16>
    %c0_1 = arith.constant 0 : index
    %c0_2 = arith.constant 0 : index
    %22 = vector.load %arg1[%c0_1, %c0_2] : memref<64x128xf32, #tpu.memory_space<vmem>>, vector<64x128xf32>
    %23 = arith.truncf %22 : vector<64x128xf32> to vector<64x128xbf16>
    %cst_3 = arith.constant dense<0.000000e+00> : vector<64x128xf32>
    %24 = tpu.matmul %21, %23, %cst_3 {dimension_numbers = #tpu.dot_dimension_numbers<[1], [0], [0], [1], [0, 0, 1, 1], [], []>} : vector<64x64xbf16>, vector<64x128xbf16>, vector<64x128xf32> -> vector<64x128xf32>
    %25 = arith.truncf %24 : vector<64x128xf32> to vector<64x128xbf16>
    %c0_4 = arith.constant 0 : index
    %c0_5 = arith.constant 0 : index
    %c0_6 = arith.constant 0 : index
    %26 = vector.load %arg2[%c0_4, %c0_5, %c0_6] : memref<6x128x128xbf16, #tpu.memory_space<vmem>>, vector<1x128x128xbf16>
    %27 = vector.shape_cast %26 : vector<1x128x128xbf16> to vector<128x128xbf16>
    %cst_7 = arith.constant dense<0.000000e+00> : vector<64x128xf32>
    %28 = tpu.matmul %25, %27, %cst_7 {dimension_numbers = #tpu.dot_dimension_numbers<[1], [0], [0], [1], [0, 0, 1, 1], [], []>} : vector<64x128xbf16>, vector<128x128xbf16>, vector<64x128xf32> -> vector<64x128xf32>
    %c0_8 = arith.constant 0 : index
    %c0_9 = arith.constant 0 : index
    %c0_10 = arith.constant 0 : index
    %29 = vector.load %arg3[%c0_8, %c0_9, %c0_10] : memref<6x1x128xf32, #tpu.memory_space<vmem>>, vector<1x1x128xf32>
    %30 = vector.shape_cast %29 : vector<1x1x128xf32> to vector<1x128xf32>
    %31 = vector.broadcast %30 : vector<1x128xf32> to vector<64x128xf32>
    %32 = arith.addf %28, %31 : vector<64x128xf32>
    %cst_11 = arith.constant 0.000000e+00 : f32
    %33 = vector.broadcast %cst_11 : f32 to vector<64x128xf32>
    %34 = arith.maximumf %32, %33 : vector<64x128xf32>
    %35 = arith.truncf %34 : vector<64x128xf32> to vector<64x128xbf16>
    %c1 = arith.constant 1 : index
    %c0_12 = arith.constant 0 : index
    %c0_13 = arith.constant 0 : index
    %36 = vector.load %arg2[%c1, %c0_12, %c0_13] : memref<6x128x128xbf16, #tpu.memory_space<vmem>>, vector<1x128x128xbf16>
    %37 = vector.shape_cast %36 : vector<1x128x128xbf16> to vector<128x128xbf16>
    %cst_14 = arith.constant dense<0.000000e+00> : vector<64x128xf32>
    %38 = tpu.matmul %35, %37, %cst_14 {dimension_numbers = #tpu.dot_dimension_numbers<[1], [0], [0], [1], [0, 0, 1, 1], [], []>} : vector<64x128xbf16>, vector<128x128xbf16>, vector<64x128xf32> -> vector<64x128xf32>
    %c1_15 = arith.constant 1 : index
    %c0_16 = arith.constant 0 : index
    %c0_17 = arith.constant 0 : index
    %39 = vector.load %arg3[%c1_15, %c0_16, %c0_17] : memref<6x1x128xf32, #tpu.memory_space<vmem>>, vector<1x1x128xf32>
    %40 = vector.shape_cast %39 : vector<1x1x128xf32> to vector<1x128xf32>
    %41 = vector.broadcast %40 : vector<1x128xf32> to vector<64x128xf32>
    %42 = arith.addf %38, %41 : vector<64x128xf32>
    %cst_18 = arith.constant 0.000000e+00 : f32
    %43 = vector.broadcast %cst_18 : f32 to vector<64x128xf32>
    %44 = arith.maximumf %42, %43 : vector<64x128xf32>
    %45 = arith.truncf %44 : vector<64x128xf32> to vector<64x128xbf16>
    %cst_19 = arith.constant dense<0.000000e+00> : vector<64x128xf32>
    %46 = tpu.matmul %21, %45, %cst_19 {dimension_numbers = #tpu.dot_dimension_numbers<[1], [0], [0], [1], [0, 0, 1, 1], [], []>} : vector<64x64xbf16>, vector<64x128xbf16>, vector<64x128xf32> -> vector<64x128xf32>
    %47 = arith.truncf %46 : vector<64x128xf32> to vector<64x128xbf16>
    %c2 = arith.constant 2 : index
    %c0_20 = arith.constant 0 : index
    %c0_21 = arith.constant 0 : index
    %48 = vector.load %arg2[%c2, %c0_20, %c0_21] : memref<6x128x128xbf16, #tpu.memory_space<vmem>>, vector<1x128x128xbf16>
    %49 = vector.shape_cast %48 : vector<1x128x128xbf16> to vector<128x128xbf16>
    %cst_22 = arith.constant dense<0.000000e+00> : vector<64x128xf32>
    %50 = tpu.matmul %47, %49, %cst_22 {dimension_numbers = #tpu.dot_dimension_numbers<[1], [0], [0], [1], [0, 0, 1, 1], [], []>} : vector<64x128xbf16>, vector<128x128xbf16>, vector<64x128xf32> -> vector<64x128xf32>
    %c2_23 = arith.constant 2 : index
    %c0_24 = arith.constant 0 : index
    %c0_25 = arith.constant 0 : index
    %51 = vector.load %arg3[%c2_23, %c0_24, %c0_25] : memref<6x1x128xf32, #tpu.memory_space<vmem>>, vector<1x1x128xf32>
    %52 = vector.shape_cast %51 : vector<1x1x128xf32> to vector<1x128xf32>
    %53 = vector.broadcast %52 : vector<1x128xf32> to vector<64x128xf32>
    %54 = arith.addf %50, %53 : vector<64x128xf32>
    %cst_26 = arith.constant 0.000000e+00 : f32
    %55 = vector.broadcast %cst_26 : f32 to vector<64x128xf32>
    %56 = arith.maximumf %54, %55 : vector<64x128xf32>
    %57 = arith.truncf %56 : vector<64x128xf32> to vector<64x128xbf16>
    %c3 = arith.constant 3 : index
    %c0_27 = arith.constant 0 : index
    %c0_28 = arith.constant 0 : index
    %58 = vector.load %arg2[%c3, %c0_27, %c0_28] : memref<6x128x128xbf16, #tpu.memory_space<vmem>>, vector<1x128x128xbf16>
    %59 = vector.shape_cast %58 : vector<1x128x128xbf16> to vector<128x128xbf16>
    %cst_29 = arith.constant dense<0.000000e+00> : vector<64x128xf32>
    %60 = tpu.matmul %57, %59, %cst_29 {dimension_numbers = #tpu.dot_dimension_numbers<[1], [0], [0], [1], [0, 0, 1, 1], [], []>} : vector<64x128xbf16>, vector<128x128xbf16>, vector<64x128xf32> -> vector<64x128xf32>
    %c3_30 = arith.constant 3 : index
    %c0_31 = arith.constant 0 : index
    %c0_32 = arith.constant 0 : index
    %61 = vector.load %arg3[%c3_30, %c0_31, %c0_32] : memref<6x1x128xf32, #tpu.memory_space<vmem>>, vector<1x1x128xf32>
    %62 = vector.shape_cast %61 : vector<1x1x128xf32> to vector<1x128xf32>
    %63 = vector.broadcast %62 : vector<1x128xf32> to vector<64x128xf32>
    %64 = arith.addf %60, %63 : vector<64x128xf32>
    %cst_33 = arith.constant 0.000000e+00 : f32
    %65 = vector.broadcast %cst_33 : f32 to vector<64x128xf32>
    %66 = arith.maximumf %64, %65 : vector<64x128xf32>
    %67 = arith.truncf %66 : vector<64x128xf32> to vector<64x128xbf16>
    %cst_34 = arith.constant dense<0.000000e+00> : vector<64x128xf32>
    %68 = tpu.matmul %21, %67, %cst_34 {dimension_numbers = #tpu.dot_dimension_numbers<[1], [0], [0], [1], [0, 0, 1, 1], [], []>} : vector<64x64xbf16>, vector<64x128xbf16>, vector<64x128xf32> -> vector<64x128xf32>
    %69 = arith.truncf %68 : vector<64x128xf32> to vector<64x128xbf16>
    %c4 = arith.constant 4 : index
    %c0_35 = arith.constant 0 : index
    %c0_36 = arith.constant 0 : index
    %70 = vector.load %arg2[%c4, %c0_35, %c0_36] : memref<6x128x128xbf16, #tpu.memory_space<vmem>>, vector<1x128x128xbf16>
    %71 = vector.shape_cast %70 : vector<1x128x128xbf16> to vector<128x128xbf16>
    %cst_37 = arith.constant dense<0.000000e+00> : vector<64x128xf32>
    %72 = tpu.matmul %69, %71, %cst_37 {dimension_numbers = #tpu.dot_dimension_numbers<[1], [0], [0], [1], [0, 0, 1, 1], [], []>} : vector<64x128xbf16>, vector<128x128xbf16>, vector<64x128xf32> -> vector<64x128xf32>
    %c4_38 = arith.constant 4 : index
    %c0_39 = arith.constant 0 : index
    %c0_40 = arith.constant 0 : index
    %73 = vector.load %arg3[%c4_38, %c0_39, %c0_40] : memref<6x1x128xf32, #tpu.memory_space<vmem>>, vector<1x1x128xf32>
    %74 = vector.shape_cast %73 : vector<1x1x128xf32> to vector<1x128xf32>
    %75 = vector.broadcast %74 : vector<1x128xf32> to vector<64x128xf32>
    %76 = arith.addf %72, %75 : vector<64x128xf32>
    %cst_41 = arith.constant 0.000000e+00 : f32
    %77 = vector.broadcast %cst_41 : f32 to vector<64x128xf32>
    %78 = arith.maximumf %76, %77 : vector<64x128xf32>
    %79 = arith.truncf %78 : vector<64x128xf32> to vector<64x128xbf16>
    %c5 = arith.constant 5 : index
    %c0_42 = arith.constant 0 : index
    %c0_43 = arith.constant 0 : index
    %80 = vector.load %arg2[%c5, %c0_42, %c0_43] : memref<6x128x128xbf16, #tpu.memory_space<vmem>>, vector<1x128x128xbf16>
    %81 = vector.shape_cast %80 : vector<1x128x128xbf16> to vector<128x128xbf16>
    %cst_44 = arith.constant dense<0.000000e+00> : vector<64x128xf32>
    %82 = tpu.matmul %79, %81, %cst_44 {dimension_numbers = #tpu.dot_dimension_numbers<[1], [0], [0], [1], [0, 0, 1, 1], [], []>} : vector<64x128xbf16>, vector<128x128xbf16>, vector<64x128xf32> -> vector<64x128xf32>
    %c5_45 = arith.constant 5 : index
    %c0_46 = arith.constant 0 : index
    %c0_47 = arith.constant 0 : index
    %83 = vector.load %arg3[%c5_45, %c0_46, %c0_47] : memref<6x1x128xf32, #tpu.memory_space<vmem>>, vector<1x1x128xf32>
    %84 = vector.shape_cast %83 : vector<1x1x128xf32> to vector<1x128xf32>
    %85 = vector.broadcast %84 : vector<1x128xf32> to vector<64x128xf32>
    %86 = arith.addf %82, %85 : vector<64x128xf32>
    %cst_48 = arith.constant 0.000000e+00 : f32
    %87 = vector.broadcast %cst_48 : f32 to vector<64x128xf32>
    %88 = arith.maximumf %86, %87 : vector<64x128xf32>
    %89 = arith.truncf %88 : vector<64x128xf32> to vector<64x128xbf16>
    %c0_49 = arith.constant 0 : index
    %c0_50 = arith.constant 0 : index
    %90 = vector.load %arg4[%c0_49, %c0_50] : memref<128x256xbf16, #tpu.memory_space<vmem>>, vector<128x256xbf16>
    %cst_51 = arith.constant dense<0.000000e+00> : vector<64x256xf32>
    %91 = tpu.matmul %89, %90, %cst_51 {dimension_numbers = #tpu.dot_dimension_numbers<[1], [0], [0], [1], [0, 0, 1, 1], [], []>} : vector<64x128xbf16>, vector<128x256xbf16>, vector<64x256xf32> -> vector<64x256xf32>
    %c0_52 = arith.constant 0 : index
    %c0_53 = arith.constant 0 : index
    %92 = vector.load %arg5[%c0_52, %c0_53] : memref<1x256xf32, #tpu.memory_space<vmem>>, vector<1x256xf32>
    %93 = vector.broadcast %92 : vector<1x256xf32> to vector<64x256xf32>
    %94 = arith.addf %91, %93 : vector<64x256xf32>
    %95 = vector.extract_strided_slice %94 {offsets = [0, 0], sizes = [64, 128], strides = [1, 1]} : vector<64x256xf32> to vector<64x128xf32>
    %96 = math.tanh %95 : vector<64x128xf32>
    %97 = vector.extract_strided_slice %94 {offsets = [0, 128], sizes = [64, 128], strides = [1, 1]} : vector<64x256xf32> to vector<64x128xf32>
    %98 = arith.negf %97 : vector<64x128xf32>
    %99 = math.exp %98 : vector<64x128xf32>
    %cst_54 = arith.constant 1.000000e+00 : f32
    %100 = vector.broadcast %cst_54 : f32 to vector<64x128xf32>
    %101 = arith.addf %100, %99 : vector<64x128xf32>
    %102 = arith.divf %100, %101 : vector<64x128xf32>
    %103 = arith.mulf %96, %102 : vector<64x128xf32>
    %c0_55 = arith.constant 0 : index
    %c0_56 = arith.constant 0 : index
    %104 = vector.load %arg6[%c0_55, %c0_56] : memref<1x128xf32, #tpu.memory_space<vmem>>, vector<1x128xf32>
    %cst_57 = arith.constant dense<0.000000e+00> : vector<1x64xf32>
    %105 = tpu.matmul %104, %103, %cst_57 {dimension_numbers = #tpu.dot_dimension_numbers<[1], [1], [0], [0], [0, 0, 1, 0], [], []>} : vector<1x128xf32>, vector<64x128xf32>, vector<1x64xf32> -> vector<1x64xf32>
    %c0_58 = arith.constant 0 : index
    %c0_59 = arith.constant 0 : index
    %106 = vector.load %arg7[%c0_58, %c0_59] : memref<1x1xf32, #tpu.memory_space<vmem>>, vector<1x1xf32>
    %107 = vector.broadcast %106 : vector<1x1xf32> to vector<1x64xf32>
    %108 = arith.addf %105, %107 : vector<1x64xf32>
    %c0_60 = arith.constant 0 : index
    %c0_61 = arith.constant 0 : index
    %109 = vector.load %arg14[%c0_60, %c0_61] : memref<1x64xf32, #tpu.memory_space<vmem>>, vector<1x64xf32>
    tpu.vector_store %arg14[%c0_60, %c0_61], %108 {strides = array<i32>} : memref<1x64xf32, #tpu.memory_space<vmem>>, vector<1x64xf32>,
    %cst_62 = arith.constant dense<0xFF800000> : vector<1xf32>
    %110 = vector.multi_reduction <maximumf>, %108, %cst_62 [1] : vector<1x64xf32> to vector<1xf32>
    %111 = vector.shape_cast %110 : vector<1xf32> to vector<1x1xf32>
    %112 = vector.broadcast %111 : vector<1x1xf32> to vector<1x64xf32>
    %113 = arith.subf %108, %112 : vector<1x64xf32>
    %114 = math.exp %113 : vector<1x64xf32>
    %cst_63 = arith.constant dense<0.000000e+00> : vector<1xf32>
    %115 = vector.multi_reduction <add>, %114, %cst_63 [1] : vector<1x64xf32> to vector<1xf32>
    %116 = vector.shape_cast %115 : vector<1xf32> to vector<1x1xf32>
    %117 = tpu.reciprocal %116 : vector<1x1xf32> -> vector<1x1xf32>
    %118 = vector.broadcast %117 : vector<1x1xf32> to vector<1x64xf32>
    %119 = arith.mulf %114, %118 : vector<1x64xf32>
    %cst_64 = arith.constant dense<0.000000e+00> : vector<1x128xf32>
    %120 = tpu.matmul %119, %88, %cst_64 {dimension_numbers = #tpu.dot_dimension_numbers<[1], [0], [0], [1], [0, 0, 1, 1], [], []>} : vector<1x64xf32>, vector<64x128xf32>, vector<1x128xf32> -> vector<1x128xf32>
    %c0_65 = arith.constant 0 : index
    %c0_66 = arith.constant 0 : index
    %121 = vector.load %arg8[%c0_65, %c0_66] : memref<128x128xf32, #tpu.memory_space<vmem>>, vector<128x128xf32>
    %cst_67 = arith.constant dense<0.000000e+00> : vector<1x128xf32>
    %122 = tpu.matmul %120, %121, %cst_67 {dimension_numbers = #tpu.dot_dimension_numbers<[1], [0], [0], [1], [0, 0, 1, 1], [], []>} : vector<1x128xf32>, vector<128x128xf32>, vector<1x128xf32> -> vector<1x128xf32>
    %c0_68 = arith.constant 0 : index
    %c0_69 = arith.constant 0 : index
    %123 = vector.load %arg9[%c0_68, %c0_69] : memref<1x128xf32, #tpu.memory_space<vmem>>, vector<1x128xf32>
    %124 = arith.addf %122, %123 : vector<1x128xf32>
    %cst_70 = arith.constant 0.000000e+00 : f32
    %125 = vector.broadcast %cst_70 : f32 to vector<1x128xf32>
    %126 = arith.maximumf %124, %125 : vector<1x128xf32>
    %c0_71 = arith.constant 0 : index
    %c0_72 = arith.constant 0 : index
    %127 = vector.load %arg10[%c0_71, %c0_72] : memref<128x4xf32, #tpu.memory_space<vmem>>, vector<128x4xf32>
    %cst_73 = arith.constant dense<0.000000e+00> : vector<1x4xf32>
    %128 = tpu.matmul %126, %127, %cst_73 {dimension_numbers = #tpu.dot_dimension_numbers<[1], [0], [0], [1], [0, 0, 1, 1], [], []>} : vector<1x128xf32>, vector<128x4xf32>, vector<1x4xf32> -> vector<1x4xf32>
    %c0_74 = arith.constant 0 : index
    %c0_75 = arith.constant 0 : index
    %129 = vector.load %arg11[%c0_74, %c0_75] : memref<1x4xf32, #tpu.memory_space<vmem>>, vector<1x4xf32>
    %130 = arith.addf %128, %129 : vector<1x4xf32>
    %131 = arith.negf %130 : vector<1x4xf32>
    %132 = math.exp %131 : vector<1x4xf32>
    %cst_76 = arith.constant 1.000000e+00 : f32
    %133 = vector.broadcast %cst_76 : f32 to vector<1x4xf32>
    %134 = arith.addf %133, %132 : vector<1x4xf32>
    %135 = arith.divf %133, %134 : vector<1x4xf32>
    %cst_77 = arith.constant 1.000000e+00 : f32
    %136 = vector.broadcast %cst_77 : f32 to vector<1x4xf32>
    %137 = arith.subf %136, %135 : vector<1x4xf32>
    %cst_78 = arith.constant 1.000000e+00 : f32
    %138 = vector.broadcast %cst_78 : f32 to vector<1x1xf32>
    %139 = vector.extract_strided_slice %137 {offsets = [0, 0], sizes = [1, 1], strides = [1, 1]} : vector<1x4xf32> to vector<1x1xf32>
    %140 = arith.mulf %138, %139 : vector<1x1xf32>
    %141 = vector.extract_strided_slice %137 {offsets = [0, 1], sizes = [1, 1], strides = [1, 1]} : vector<1x4xf32> to vector<1x1xf32>
    %142 = arith.mulf %140, %141 : vector<1x1xf32>
    %143 = vector.extract_strided_slice %137 {offsets = [0, 2], sizes = [1, 1], strides = [1, 1]} : vector<1x4xf32> to vector<1x1xf32>
    %144 = arith.mulf %142, %143 : vector<1x1xf32>
    %145 = vector.extract_strided_slice %137 {offsets = [0, 3], sizes = [1, 1], strides = [1, 1]} : vector<1x4xf32> to vector<1x1xf32>
    %146 = arith.mulf %144, %145 : vector<1x1xf32>
    %147 = tpu.concatenate %140, %142, %144, %146 in 1 : vector<1x1xf32>, vector<1x1xf32>, vector<1x1xf32>, vector<1x1xf32> -> vector<1x4xf32>
    %148 = tpu.concatenate %135, %147 in 0 : vector<1x4xf32>, vector<1x4xf32> -> vector<2x4xf32>
    %c0_79 = arith.constant 0 : index
    %c0_80 = arith.constant 0 : index
    %149 = vector.load %arg12[%c0_79, %c0_80] : memref<2x4xf32, #tpu.memory_space<vmem>>, vector<2x4xf32>
    tpu.vector_store %arg12[%c0_79, %c0_80], %148 {strides = array<i32>} : memref<2x4xf32, #tpu.memory_space<vmem>>, vector<2x4xf32>,
    %150 = tpu.iota {dimensions = array<i32: 1>} : vector<1x4xi32>
    %cst_81 = arith.constant dense<0xFF800000> : vector<1xf32>
    %151 = vector.multi_reduction <maximumf>, %130, %cst_81 [1] : vector<1x4xf32> to vector<1xf32>
    %152 = vector.shape_cast %151 : vector<1xf32> to vector<1x1xf32>
    %153 = vector.broadcast %152 : vector<1x1xf32> to vector<1x4xf32>
    %154 = arith.cmpf oeq, %130, %153 : vector<1x4xf32>
    %c4_i32 = arith.constant 4 : i32
    %155 = vector.broadcast %c4_i32 : i32 to vector<1x4xi32>
    %156 = arith.select %154, %150, %155 : vector<1x4xi1>, vector<1x4xi32>
    %cst_82 = arith.constant dense<2147483647> : vector<1xi32>
    %157 = vector.multi_reduction <minsi>, %156, %cst_82 [1] : vector<1x4xi32> to vector<1xi32>
    %158 = vector.shape_cast %157 : vector<1xi32> to vector<1x1xi32>
    %c0_83 = arith.constant 0 : index
    %c0_84 = arith.constant 0 : index
    %159 = vector.load %arg13[%c0_83, %c0_84] : memref<1x1xi32, #tpu.memory_space<vmem>>, vector<1x1xi32>
    tpu.vector_store %arg13[%c0_83, %c0_84], %158 {strides = array<i32>} : memref<1x1xi32, #tpu.memory_space<vmem>>, vector<1x1xi32>,
    return
  }
}

</mosaic_0001>

<bundles_post_ra>
// kernel: tpu_custom_call.1
= control target key start
LH: loop header
LB: loop body
LE: loop exit
PB: predicated region body
PF: predicated region fallthrough
CT: control target
= control target key end

     0   :  { %s3657_s0 = inlined_call_operand.vmem [shape: s32[2,256], index: 0, kind: input, shape index: {}]   ;;  %s3658_s1 = inlined_call_operand.hbm [shape: f32[64,128], index: 1, kind: input, shape index: {}]   ;;  %s3659_s2 = inlined_call_operand.hbm [shape: bf16[6,128,128], index: 2, kind: input, shape index: {}]   ;;  %s3660_s3 = inlined_call_operand.vmem [shape: f32[6,1,128], index: 3, kind: input, shape index: {}]   ;;  %s3661_s4 = inlined_call_operand.vmem [shape: bf16[128,256], index: 4, kind: input, shape index: {}]   ;;  %s3662_s5 = inlined_call_operand.vmem [shape: f32[1,256], index: 5, kind: input, shape index: {}]   ;;  %s3663_s6 = inlined_call_operand.vmem [shape: f32[1,128], index: 6, kind: input, shape index: {}]   ;;  %s3664_s7 = inlined_call_operand.<no memory space> [shape: f32[1,1], index: 7, kind: input, shape index: {}]   ;;  %s3665_s8 = inlined_call_operand.hbm [shape: f32[128,128], index: 8, kind: input, shape index: {}]   ;;  %s3666_s9 = inlined_call_operand.vmem [shape: f32[1,128], index: 9, kind: input, shape index: {}]   ;;  %s3667_s10 = inlined_call_operand.vmem [shape: f32[128,4], index: 10, kind: input, shape index: {}]   ;;  %s3668_s11 = inlined_call_operand.vmem [shape: f32[1,4], index: 11, kind: input, shape index: {}]   ;;  %s3669_s12 = inlined_call_operand.hbm [shape: f32[2,4], index: 12, kind: output, shape index: {0}]   ;;  %s3670_s13 = inlined_call_operand.hbm [shape: s32[1,1], index: 13, kind: output, shape index: {1}]   ;;  %s3671_s14 = inlined_call_operand.hbm [shape: f32[1,64], index: 14, kind: output, shape index: {2}]  }
   0x1   :  { %v20_v0 = vstv %s3664_s7 }
   0x2   :  { %21 = vst [vmem:[#allocation2] sm:$0x1] %v20_v0 }
   0x3   :  { %22 = vsyncpa [#allocation4], 0 }
   0x4   :  { %23 = vsyncpa [#allocation7], 0 }
   0x5   :  { %24 = vsyncpa [#allocation5], 0 }
   0x6   :  { %25 = vsyncpa [#allocation11], 0  ;;  %s3146_s15 = smov [#allocation6]   ;;  %s3006_s19 = scalar_lea.hbm %s3659_s2, 6144 }
   0x7   :  { %s45_s16 = sshll.u32 %s3146_s15, 4  ;;  %p3007_p0 = scmp.ne.s32.totalorder %s3659_s2, %s3006_s19  ;;  %s46_s16 = int_to_ptr.vmem [resolvable:$true] %s45_s16 }
   0x8   :  { %p3010_p1 = scmp.lt.u32.totalorder %s3006_s19, %s3659_s2 }
   0xa   :  { %p3012_p2 = pnand %p3010_p1, %p3007_p0 }
   0xc   :  { %3015 = shalt.err (!%p3012_p2)
}
   0xd   :  { %s3016_s7 = scalar_lea.vmem %s46_s16, 6144  ;;  %p3021_p4 = scmp.lt.s32.totalorder %s46_s16, %s46_s16 }
   0xe   :  { %p3017_p3 = scmp.ne.s32.totalorder %s46_s16, %s3016_s7  ;;  %p3022_p5 = scmp.lt.s32.totalorder %s3016_s7, %s3016_s7 }
  0x10   :  { %p3023_p6 = por %p3022_p5, %p3021_p4 }
  0x12   :  { %p3024_p7 = pnand %p3023_p6, %p3017_p3 }
  0x14   :  { %3027 = shalt.err (!%p3024_p7)
}
  0x15   :  { %s3147_s24 = smov 64   ;;  %s3148_s25 = smov 4  }
  0x16   :  { %51 = dma.hbm_to_vmem [thread:$0]  %s3659_s2, 6144, %s46_s16, [#allocation7], %s3147_s24, %s3147_s24, %s3148_s25  }
  0x17   :  { %s3149_s28 = smov [#allocation3]   ;;  %s3028_s17 = scalar_lea.hbm %s3658_s1, 1024 }
  0x18   :  { %s33_s29 = sshll.u32 %s3149_s28, 4  ;;  %p3029_p8 = scmp.ne.s32.totalorder %s3658_s1, %s3028_s17  ;;  %s34_s29 = int_to_ptr.vmem [resolvable:$true] %s33_s29 }
  0x19   :  { %p3032_p9 = scmp.lt.u32.totalorder %s3028_s17, %s3658_s1 }
  0x1b   :  { %p3034_p10 = pnand %p3032_p9, %p3029_p8 }
  0x1d   :  { %3037 = shalt.err (!%p3034_p10)
}
  0x1e   :  { %s3038_s22 = scalar_lea.vmem %s34_s29, 1024  ;;  %p3043_p12 = scmp.lt.s32.totalorder %s34_s29, %s34_s29 }
  0x1f   :  { %p3039_p11 = scmp.ne.s32.totalorder %s34_s29, %s3038_s22  ;;  %p3044_p13 = scmp.lt.s32.totalorder %s3038_s22, %s3038_s22 }
  0x21   :  { %p3045_p0 = por %p3044_p13, %p3043_p12 }
  0x23   :  { %p3046_p1 = pnand %p3045_p0, %p3039_p11 }
  0x25   :  { %3049 = shalt.err (!%p3046_p1)
}
  0x26   :  { %s3150_s2 = smov 128   ;;  %s3151_s16 = smov 8  }
  0x27   :  { %39 = dma.hbm_to_vmem [thread:$0]  %s3658_s1, 1024, %s34_s29, [#allocation4], %s3150_s2, %s3150_s2, %s3151_s16  }
  0x28   :  { %s3152_s24 = smov [#allocation8]   ;;  %s3050_s28 = scalar_lea.hbm %s3665_s8, 2048 }
  0x29   :  { %s67_s25 = sshll.u32 %s3152_s24, 4  ;;  %p3051_p2 = scmp.ne.s32.totalorder %s3665_s8, %s3050_s28  ;;  %s68_s25 = int_to_ptr.vmem [resolvable:$true] %s67_s25 }
  0x2a   :  { %p3054_p3 = scmp.lt.u32.totalorder %s3050_s28, %s3665_s8 }
  0x2c   :  { %p3056_p4 = pnand %p3054_p3, %p3051_p2 }
  0x2e   :  { %3059 = shalt.err (!%p3056_p4)
}
  0x2f   :  { %s3060_s19 = scalar_lea.vmem %s68_s25, 2048  ;;  %p3065_p6 = scmp.lt.s32.totalorder %s68_s25, %s68_s25 }
  0x30   :  { %p3061_p5 = scmp.ne.s32.totalorder %s68_s25, %s3060_s19  ;;  %p3066_p7 = scmp.lt.s32.totalorder %s3060_s19, %s3060_s19 }
  0x32   :  { %p3067_p8 = por %p3066_p7, %p3065_p6 }
  0x34   :  { %p3068_p9 = pnand %p3067_p8, %p3061_p5 }
  0x36   :  { %3071 = shalt.err (!%p3068_p9)
}
  0x37   :  { %73 = dma.hbm_to_vmem [thread:$0]  %s3665_s8, 2048, %s68_s25, [#allocation7], %s3150_s2, %s3150_s2, %s3151_s16  }
  0x38   :  { %3138 = dma.done.wait [#allocation4], 1024  }
  0x39   :  { %3139 = vsyncadd [#allocation4], 4294966272 }
  0x3a   :  { %3140 = dma.done.wait [#allocation7], 8192  }
  0x3b   :  { %3141 = vsyncadd [#allocation7], 4294959104  ;;  %v91_v1 = vlaneseq  ;;  %v90_v8 = vld [vmem:[%s3657_s0] sm:$0xf]  ;;  %v340_v12 = vld [vmem:[#allocation3 + $0x8] sm:$0xff]  ;;  %v3154_v38 = vmov 0.0  }
  0x3c   :  { %v339_v11 = vld [vmem:[#allocation3] sm:$0xff]  ;;  %v3153_v21 = vmov 1.0|1.0   ;;  %v341_v27 = vld [vmem:[#allocation3 + $0x10] sm:$0xff]  ;;  %v342_v28 = vld [vmem:[#allocation3 + $0x18] sm:$0xff]  ;;  %s3161_s15 = smov 1  }
  0x3d   :  { %v3282_v2 = vshrl.u32 %v91_v1, 7  ;;  %v347_v15 = vpack.c.bf16 %v340_v12, %v339_v11  ;;  %v348_v29 = vpack.c.bf16 %v342_v28, %v341_v27  ;;  %v343_v30 = vld [vmem:[#allocation3 + $0x20] sm:$0xff]  ;;  %v344_v31 = vld [vmem:[#allocation3 + $0x28] sm:$0xff]  ;;  %v345_v33 = vld [vmem:[#allocation3 + $0x30] sm:$0xff]  ;;  %v3355_v37 = vand.u32 127, %v91_v1  ;;  %s3162_s17 = smov 3  }
  0x3e   :  { %v349_v32 = vpack.c.bf16 %v344_v31, %v343_v30  ;;  %v346_v34 = vld [vmem:[#allocation3 + $0x38] sm:$0xff]  ;;  %v2878_v36 = vld [vmem:[#allocation6] sm:$0xff]   ;;  %v2879_v57 = vld [vmem:[#allocation6 + $0x8] sm:$0xff]   ;;  %s3163_s18 = smov 2   ;;  %s3164_s19 = smov [#allocation10]  }
  0x3f   :  { %v3285_v3 = vsub.s32 0, %v3282_v2  ;;  %v106_v4 = vsub.s32 2, %v3282_v2  ;;  %v3289_v5 = vadd.s32 8, %v3282_v2  ;;  %v3292_v6 = vadd.s32 16, %v3282_v2  ;;  %2484 = vmatprep.subr.bf16.mxu1 %v347_v15  ;;  %v2880_v62 = vld [vmem:[#allocation6 + $0x10] sm:$0xff]   ;;  %v2882_v11 = vld [vmem:[#allocation6 + $0x20] sm:$0xff]  }
  0x40   :  { %v178_v7 = vsub.s32 3, %v3282_v2  ;;  %v3299_v9 = vadd.s32 24, %v3282_v2  ;;  %v3302_v10 = vsub.s32 1, %v3282_v2  ;;  %2485 = vmatpush3.bf16.msra.mxu1 %v347_v15  ;;  %v3314_v19 = vadd.s32 32, %v3282_v2  ;;  %s2140_s1 = sshll.u32 %s3164_s19, 4  ;;  %s3165_s29 = smov [#allocation12]   ;;  %s2141_s1 = int_to_ptr.vmem [resolvable:$true] %s2140_s1 }
  0x41   :  { %v107_v13 = vrot.slane %v90_v8, %v106_v4  ;;  %v103_v14 = vrot.slane %v90_v8, %v3285_v3  ;;  %v3317_v20 = vadd.s32 40, %v3282_v2  ;;  %v3327_v23 = vadd.s32 48, %v3282_v2  ;;  %2486 = vmatprep.subr.bf16.mxu1 %v348_v29  ;;  %s2150_s8 = sshll.u32 %s3165_s29, 4  ;;  %s3166_s20 = smov [#allocation9]   ;;  %s3607_s8 = int_to_ptr.vmem [resolvable:$true] %s2150_s8 }
  0x42   :  { %v179_v18 = vrot.slane %v90_v8, %v178_v7  ;;  %v3330_v24 = vadd.s32 56, %v3282_v2  ;;  %v175_v25 = vrot.slane %v90_v8, %v3302_v10  ;;  %v350_v35 = vpack.c.bf16 %v346_v34, %v345_v33  ;;  %s3609_s0 = sshll.u32 %s3166_s20, 4  ;;  %s3072_s21 = scalar_lea.vmem %s2141_s1, 16  ;;  %s2131_s0 = int_to_ptr.vmem [resolvable:$true] %s3609_s0 }
  0x43   :  { %v115_v16 = vrot.slane %v107_v13, %v3285_v3  ;;  %v111_v17 = vrot.slane %v103_v14, %v3285_v3  ;;  %p3073_p10 = scmp.ne.s32.totalorder %s2141_s1, %s3072_s21  ;;  %p3077_p11 = scmp.lt.s32.totalorder %s2141_s1, %s2141_s1 }
  0x44   :  { %v187_v22 = vrot.slane %v179_v18, %v3302_v10  ;;  %v183_v26 = vrot.slane %v175_v25, %v3302_v10  ;;  %2487 = vmatpush3.bf16.msra.mxu1 %v348_v29  ;;  %v2884_v18 = vld [vmem:[#allocation6 + $0x30] sm:$0xff]   ;;  %v2891_v25 = vld [vmem:[#allocation6 + $0x68] sm:$0xff]  }
  0x45   :  { %vm117_vm0 = vcmp.eq.s32.totalorder %v3282_v2, %v115_v16  ;;  %vm119_vm1 = vcmp.eq.s32.totalorder %v3289_v5, %v115_v16  ;;  %vm116_vm2 = vcmp.eq.s32.totalorder %v3282_v2, %v111_v17  ;;  %vm118_vm3 = vcmp.eq.s32.totalorder %v3289_v5, %v111_v17  ;;  %2488 = vmatprep.subr.bf16.mxu1 %v349_v32 }
  0x46   :  { %vm2207_vm4 = vmpackc.low %vm119_vm1, %vm117_vm0  ;;  %vm121_vm5 = vcmp.eq.s32.totalorder %v3292_v6, %v115_v16  ;;  %vm123_vm6 = vcmp.eq.s32.totalorder %v3299_v9, %v115_v16  ;;  %vm120_vm9 = vcmp.eq.s32.totalorder %v3292_v6, %v111_v17  ;;  %vm122_vm10 = vcmp.eq.s32.totalorder %v3299_v9, %v111_v17 }
  0x47   :  { %2208 = vmatprep.subr.msk.bf16.mxu0 %vm2207_vm4, %v3153_v21  ;;  %vm2209_vm7 = vmpackc.low %vm118_vm3, %vm116_vm2  ;;  %vm125_vm11 = vcmp.eq.s32.totalorder %v3314_v19, %v115_v16  ;;  %vm127_vm12 = vcmp.eq.s32.totalorder %v3317_v20, %v115_v16  ;;  %vm189_vm13 = vcmp.eq.s32.totalorder %v3282_v2, %v187_v22  ;;  %vm191_vm14 = vcmp.eq.s32.totalorder %v3289_v5, %v187_v22 }
  0x48   :  { %2210 = vmatpush1.bf16.xpose.msk.msra.mxu0 %vm2209_vm7, %v3153_v21  ;;  %vm2211_vm8 = vmpackc.low %vm123_vm6, %vm121_vm5  ;;  %vm124_vm2 = vcmp.eq.s32.totalorder %v3314_v19, %v111_v17  ;;  %vm126_vm3 = vcmp.eq.s32.totalorder %v3317_v20, %v111_v17  ;;  %vm129_vm4 = vcmp.eq.s32.totalorder %v3327_v23, %v115_v16  ;;  %vm131_vm5 = vcmp.eq.s32.totalorder %v3330_v24, %v115_v16 }
  0x49   :  { %2212 = vmatprep.subr.msk.bf16.mxu0 %vm2211_vm8, %v3153_v21  ;;  %vm2213_vm15 = vmpackc.low %vm122_vm10, %vm120_vm9  ;;  %vm128_vm6 = vcmp.eq.s32.totalorder %v3327_v23, %v111_v17  ;;  %vm130_vm7 = vcmp.eq.s32.totalorder %v3330_v24, %v111_v17  ;;  %2489 = vmatpush3.bf16.msra.mxu1 %v349_v32  ;;  %v2883_v17 = vld [vmem:[#allocation6 + $0x28] sm:$0xff]  }
  0x4a   :  { %vm2215_vm0 = vmpackc.low %vm127_vm12, %vm125_vm11  ;;  %vm188_vm11 = vcmp.eq.s32.totalorder %v3282_v2, %v183_v26  ;;  %vm190_vm12 = vcmp.eq.s32.totalorder %v3289_v5, %v183_v26  ;;  %2490 = vmatprep.subr.bf16.mxu1 %v350_v35 }
  0x4b   :  { %vm2223_vm1 = vmpackc.low %vm191_vm14, %vm189_vm13  ;;  %vm193_vm13 = vcmp.eq.s32.totalorder %v3292_v6, %v187_v22  ;;  %vm195_vm14 = vcmp.eq.s32.totalorder %v3299_v9, %v187_v22 }
  0x4c   :  { %2224 = vmatprep.mubr.msk.bf16.mxu0 %vm2223_vm1, %v3153_v21  ;;  %vm2217_vm8 = vmpackc.low %vm126_vm3, %vm124_vm2  ;;  %vm192_vm1 = vcmp.eq.s32.totalorder %v3292_v6, %v183_v26  ;;  %vm194_vm2 = vcmp.eq.s32.totalorder %v3299_v9, %v183_v26  ;;  %vm197_vm3 = vcmp.eq.s32.totalorder %v3314_v19, %v187_v22 }
  0x4d   :  { %vm2219_vm9 = vmpackc.low %vm131_vm5, %vm129_vm4  ;;  %vm199_vm4 = vcmp.eq.s32.totalorder %v3317_v20, %v187_v22  ;;  %2491 = vmatpush3.bf16.msra.mxu1 %v350_v35 }
  0x4e   :  { %vm2221_vm10 = vmpackc.low %vm130_vm7, %vm128_vm6  ;;  %vm196_vm7 = vcmp.eq.s32.totalorder %v3314_v19, %v183_v26  ;;  %2500 = vmatprep.subr.bf16.mxu1 %v2878_v36 }
  0x4f   :  { %vm2229_vm5 = vmpackc.low %vm194_vm2, %vm192_vm1  ;;  %vm247_vm1 = vcmp.eq.s32.totalorder %v3289_v5, %v3355_v37  ;;  %vm351_vm2 = vcmask 523264   ;;  %v2881_v5 = vld [vmem:[#allocation6 + $0x18] sm:$0xff]  }
  0x50   :  { %2214 = vmatpush1.bf16.xpose.msk.msra.mxu0 %vm2213_vm15, %v3153_v21  ;;  %vm2225_vm15 = vmpackc.low %vm190_vm12, %vm188_vm11  ;;  %v2200_v41 = vsel %vm247_vm1, 1.0, %v3154_v38  ;;  %vm2092_vm1 = vcmask 23552  }
  0x51   :  { %2216 = vmatprep.subr.msk.bf16.mxu0 %vm2215_vm0, %v3153_v21  ;;  %vm2227_vm0 = vmpackc.low %vm195_vm14, %vm193_vm13  ;;  %vm200_vm13 = vcmp.eq.s32.totalorder %v3327_v23, %v183_v26  ;;  %vm202_vm14 = vcmp.eq.s32.totalorder %v3330_v24, %v183_v26 }
  0x52   :  { %vm2231_vm6 = vmpackc.low %vm199_vm4, %vm197_vm3  ;;  %vm248_vm3 = vcmp.eq.s32.totalorder %v3292_v6, %v3355_v37  ;;  %vm249_vm4 = vcmp.eq.s32.totalorder %v3299_v9, %v3355_v37 }
  0x53   :  { %v2201_v48 = vsel %vm248_vm3, 1.0, %v3154_v38  ;;  %v2202_v50 = vsel %vm249_vm4, 1.0, %v3154_v38 }
  0x58   :  { %2218 = vmatpush1.bf16.xpose.msk.msra.mxu0 %vm2217_vm8, %v3153_v21  ;;  %vm198_vm8 = vcmp.eq.s32.totalorder %v3317_v20, %v183_v26 }
  0x59   :  { %2220 = vmatprep.subr.msk.bf16.mxu0 %vm2219_vm9, %v3153_v21  ;;  %vm201_vm9 = vcmp.eq.s32.totalorder %v3327_v23, %v187_v22  ;;  %vm2233_vm11 = vmpackc.low %vm198_vm8, %vm196_vm7  ;;  %vm252_vm7 = vcmp.eq.s32.totalorder %v3327_v23, %v3355_v37  ;;  %vm253_vm8 = vcmp.eq.s32.totalorder %v3330_v24, %v3355_v37  ;;  %v2889_v23 = vld [vmem:[#allocation6 + $0x58] sm:$0xff]  }
  0x5a   :  { %v2205_v6 = vsel %vm252_vm7, 1.0, %v3154_v38  ;;  %v2206_v8 = vsel %vm253_vm8, 1.0, %v3154_v38 }
  0x60   :  { %2222 = vmatpush1.bf16.xpose.msk.msra.mxu0 %vm2221_vm10, %v3153_v21  ;;  %vm203_vm10 = vcmp.eq.s32.totalorder %v3330_v24, %v187_v22  ;;  %v2888_v22 = vld [vmem:[#allocation6 + $0x50] sm:$0xff]   ;;  %v2890_v24 = vld [vmem:[#allocation6 + $0x60] sm:$0xff]  }
  0x61   :  { %vm2235_vm12 = vmpackc.low %vm203_vm10, %vm201_vm9  ;;  %vm3157_vm9 = vmmov 0   ;;  %vm1795_vm10 = vcmask 516096  }
  0x67   :  { %2226 = vmatmul.mubr.msk.bf16.vlgmr.msra.gmra.mrb[0].mxu0 %vm2225_vm15, %v3153_v21  ;;  %vm2237_vm15 = vmpackc.low %vm202_vm14, %vm200_vm13  ;;  %vm2088_vm14 = vcmask 7168  }
  0x68   :  { %2228 = vmatprep.mubr.msk.bf16.mxu0 %vm2227_vm0, %v3153_v21  ;;  %vm246_vm0 = vcmp.eq.s32.totalorder %v3282_v2, %v3355_v37 }
  0x69   :  { %v2199_v39 = vsel %vm246_vm0, 1.0, %v3154_v38  ;;  %vm2122_vm0 = vcmask 0  }
  0x6f   :  { %2230 = vmatmul.mubr.msk.bf16.gmra.mrb[4].mxu0 %vm2229_vm5, %v3153_v21  ;;  %vm250_vm5 = vcmp.eq.s32.totalorder %v3314_v19, %v3355_v37  ;;  %v2885_v19 = vld [vmem:[#allocation6 + $0x38] sm:$0xff]  }
  0x70   :  { %2232 = vmatprep.mubr.msk.bf16.mxu0 %vm2231_vm6, %v3153_v21  ;;  %vm251_vm6 = vcmp.eq.s32.totalorder %v3317_v20, %v3355_v37  ;;  %v2203_v58 = vsel %vm250_vm5, 1.0, %v3154_v38  ;;  %v2886_v20 = vld [vmem:[#allocation6 + $0x40] sm:$0xff]  }
  0x71   :  { %v2204_v60 = vsel %vm251_vm6, 1.0, %v3154_v38  ;;  %2524 = vmatprep.subr.bf16.mxu0 %v2886_v20 }
  0x72   :  { %2525 = vmatpush3.bf16.msra.mxu0 %v2886_v20  ;;  %v2253_v20 = vld [vmem:[%s3660_s3 + $0x1] ss:$0 sm:$0xff] }
  0x77   :  { %2234 = vmatmul.mubr.msk.bf16.gmra.mrb[8].mxu0 %vm2233_vm11, %v3153_v21  ;;  %vm2101_vm11 = vcmask 24576  }
  0x78   :  { %2236 = vmatprep.mubr.msk.bf16.mxu0 %vm2235_vm12, %v3153_v21 }
  0x7f   :  { %2238 = vmatmul.mubr.msk.bf16.gmra.mrb[12].mxu0 %vm2237_vm15, %v3153_v21  ;;  %v2887_v21 = vld [vmem:[#allocation6 + $0x48] sm:$0xff]   ;;  %vm2090_vm15 = vcmask 15360  }
  0x80   :  { %2526 = vmatprep.subr.bf16.mxu0 %v2887_v21 }
  0x81   :  { %2527 = vmatpush3.bf16.msra.mxu0 %v2887_v21 }
  0x82   :  { %2528 = vmatprep.subr.bf16.mxu0 %v2888_v22 }
  0x85   :  { %2529 = vmatpush3.bf16.msra.mxu0 %v2888_v22 }
  0x86   :  { %2530 = vmatprep.subr.bf16.mxu0 %v2889_v23 }
  0x89   :  { %2531 = vmatpush3.bf16.msra.mxu0 %v2889_v23 }
  0x8a   :  { %2532 = vmatprep.subr.bf16.mxu0 %v2890_v24 }
  0x8d   :  { %2533 = vmatpush3.bf16.msra.mxu0 %v2890_v24 }
  0x8e   :  { %2534 = vmatprep.subr.bf16.mxu0 %v2891_v25 }
  0x91   :  { %2535 = vmatpush3.bf16.msra.mxu0 %v2891_v25 }
 0x13a   :  { %v304_v40 = vpop.f32.mrb[0].mxu0 }
 0x13b   :  { %v305_v42 = vadd.f32 %v2199_v39, %v304_v40  ;;  %v306_v43 = vpop.f32.mrb[1].mxu0  ;;  %v2892_v40 = vld [vmem:[#allocation6 + $0x70] sm:$0xff]  }
 0x13c   :  { %v307_v44 = vpop.f32.mrb[2].mxu0  ;;  %2536 = vmatprep.subr.bf16.mxu0 %v2892_v40 }
 0x13d   :  { %v308_v45 = vadd.f32 %v2200_v41, %v307_v44  ;;  %v309_v46 = vpop.f32.mrb[3].mxu0  ;;  %2537 = vmatpush3.bf16.msra.mxu0 %v2892_v40  ;;  %v2893_v41 = vld [vmem:[#allocation6 + $0x78] sm:$0xff]  }
 0x13e   :  { %2538 = vmatprep.subr.bf16.mxu0 %v2893_v41 }
 0x13f   :  { %v3363_v47 = vpack.c.bf16 %v308_v45, %v305_v42  ;;  %v2243_v42 = vld [vmem:[%s3660_s3] ss:$0 sm:$0xff] }
 0x141   :  { %2492 = vmatprep.mubr.msk.bf16.mxu1 %vm351_vm2, %v3363_v47  ;;  %2539 = vmatpush3.bf16.msra.mxu0 %v2893_v41 }
 0x142   :  { %v312_v49 = vpop.f32.mrb[4].mxu0 }
 0x143   :  { %v314_v51 = vpop.f32.mrb[5].mxu0  ;;  %v313_v53 = vadd.f32 %v2201_v48, %v312_v49 }
 0x144   :  { %v315_v52 = vpop.f32.mrb[6].mxu0 }
 0x145   :  { %v316_v54 = vadd.f32 %v2202_v50, %v315_v52  ;;  %v317_v55 = vpop.f32.mrb[7].mxu0 }
 0x147   :  { %v3373_v56 = vpack.c.bf16 %v316_v54, %v313_v53 }
 0x149   :  { %2493 = vmatmul.mubr.msk.bf16.vlgmr.msra.gmra.mrb[0].mxu1 %vm351_vm2, %v3373_v56 }
 0x14a   :  { %v320_v59 = vpop.f32.mrb[8].mxu0  ;;  %2501 = vmatpush3.bf16.msra.mxu1 %v2878_v36 }
 0x14b   :  { %v322_v61 = vpop.f32.mrb[9].mxu0  ;;  %2502 = vmatprep.subr.bf16.mxu1 %v2879_v57  ;;  %v321_v0 = vadd.f32 %v2203_v58, %v320_v59 }
 0x14c   :  { %v323_v63 = vpop.f32.mrb[10].mxu0 }
 0x14d   :  { %v324_v1 = vadd.f32 %v2204_v60, %v323_v63  ;;  %v325_v2 = vpop.f32.mrb[11].mxu0 }
 0x14e   :  { %2503 = vmatpush3.bf16.msra.mxu1 %v2879_v57 }
 0x14f   :  { %v3383_v4 = vpack.c.bf16 %v324_v1, %v321_v0  ;;  %2504 = vmatprep.subr.bf16.mxu1 %v2880_v62 }
 0x151   :  { %2496 = vmatprep.mubr.msk.bf16.mxu1 %vm351_vm2, %v3383_v4 }
 0x152   :  { %v328_v7 = vpop.f32.mrb[12].mxu0  ;;  %2505 = vmatpush3.bf16.msra.mxu1 %v2880_v62 }
 0x153   :  { %v330_v9 = vpop.f32.mrb[13].mxu0  ;;  %2506 = vmatprep.subr.bf16.mxu1 %v2881_v5  ;;  %v329_v13 = vadd.f32 %v2205_v6, %v328_v7 }
 0x154   :  { %v331_v12 = vpop.f32.mrb[14].mxu0 }
 0x155   :  { %v332_v14 = vadd.f32 %v2206_v8, %v331_v12  ;;  %v333_v15 = vpop.f32.mrb[15].mxu0  ;;  %v2894_v12 = vld [vmem:[#allocation6 + $0x80] sm:$0xff]  }
 0x156   :  { %2507 = vmatpush3.bf16.msra.mxu1 %v2881_v5  ;;  %2564 = vmatprep.subr.bf16.mxu0 %v2894_v12  ;;  %v2897_v15 = vld [vmem:[#allocation6 + $0x98] sm:$0xff]  }
 0x157   :  { %v3393_v16 = vpack.c.bf16 %v332_v14, %v329_v13  ;;  %2508 = vmatprep.subr.bf16.mxu1 %v2882_v11  ;;  %v2895_v13 = vld [vmem:[#allocation6 + $0x88] sm:$0xff]   ;;  %v2896_v14 = vld [vmem:[#allocation6 + $0x90] sm:$0xff]  }
 0x159   :  { %2497 = vmatmul.mubr.msk.bf16.gmra.mrb[4].mxu1 %vm351_vm2, %v3393_v16 }
 0x15a   :  { %2509 = vmatpush3.bf16.msra.mxu1 %v2882_v11 }
 0x15b   :  { %2510 = vmatprep.subr.bf16.mxu1 %v2883_v17 }
 0x15e   :  { %2511 = vmatpush3.bf16.msra.mxu1 %v2883_v17  ;;  %v2898_v17 = vld [vmem:[#allocation6 + $0xa0] sm:$0xff]  }
 0x15f   :  { %2512 = vmatprep.subr.bf16.mxu1 %v2884_v18 }
 0x162   :  { %2513 = vmatpush3.bf16.msra.mxu1 %v2884_v18  ;;  %v2899_v18 = vld [vmem:[#allocation6 + $0xa8] sm:$0xff]  }
 0x163   :  { %2514 = vmatprep.subr.bf16.mxu1 %v2885_v19 }
 0x166   :  { %2515 = vmatpush3.bf16.msra.mxu1 %v2885_v19  ;;  %v2900_v19 = vld [vmem:[#allocation6 + $0xb0] sm:$0xff]  }
 0x21c   :  { %v2494_v26 = vpop.f32.mrb[0].mxu1 }
 0x21d   :  { %v398_v27 = vpop.f32.mrb[1].mxu1 }
 0x21e   :  { %v2495_v28 = vpop.f32.mrb[2].mxu1 }
 0x21f   :  { %v430_v29 = vpack.c.bf16 %v2495_v28, %v2494_v26  ;;  %v401_v30 = vpop.f32.mrb[3].mxu1 }
 0x220   :  { %v429_v31 = vpack.c.bf16 %v401_v30, %v398_v27 }
 0x222   :  { %2516 = vmatprep.mubr.bf16.mxu1 %v429_v31 }
 0x223   :  { %2517 = vmatmul.mubr.bf16.vlgmr.msra.gmra.mrb[8].mxu1 %v430_v29 }
 0x22c   :  { %v2498_v32 = vpop.f32.mrb[4].mxu1 }
 0x22d   :  { %v414_v33 = vpop.f32.mrb[5].mxu1 }
 0x22e   :  { %v2499_v34 = vpop.f32.mrb[6].mxu1 }
 0x22f   :  { %v432_v35 = vpack.c.bf16 %v2499_v34, %v2498_v32  ;;  %v417_v36 = vpop.f32.mrb[7].mxu1 }
 0x230   :  { %v431_v39 = vpack.c.bf16 %v417_v36, %v414_v33 }
 0x232   :  { %2520 = vmatprep.mubr.bf16.mxu1 %v431_v39 }
 0x233   :  { %2521 = vmatmul.mubr.bf16.gmra.mrb[12].mxu1 %v432_v35 }
 0x234   :  { %2556 = vmatprep.mubr.msk.bf16.mxu1 %vm351_vm2, %v3363_v47 }
 0x2f6   :  { %v2518_v43 = vpop.f32.mrb[8].mxu1 }
 0x2f7   :  { %v547_v44 = vadd.f32 %v2518_v43, %v2243_v42  ;;  %v538_v45 = vpop.f32.mrb[9].mxu1 }
 0x2f8   :  { %v539_v46 = vadd.f32 %v2243_v42, %v538_v45  ;;  %v2519_v48 = vpop.f32.mrb[10].mxu1 }
 0x2f9   :  { %v550_v49 = vadd.f32 %v2519_v48, %v2243_v42  ;;  %v541_v50 = vpop.f32.mrb[11].mxu1  ;;  %v571_v52 = vmax.f32 %v547_v44, 0.0 }
 0x2fa   :  { %v542_v51 = vadd.f32 %v2243_v42, %v541_v50  ;;  %v569_v54 = vmax.f32 %v539_v46, 0.0 }
 0x2fb   :  { %v572_v53 = vmax.f32 %v550_v49, 0.0 }
 0x2fc   :  { %v570_v55 = vmax.f32 %v542_v51, 0.0 }
 0x2fd   :  { %v578_v57 = vpack.c.bf16 %v572_v53, %v571_v52  ;;  %v2901_v52 = vld [vmem:[#allocation6 + $0xb8] sm:$0xff]   ;;  %v2902_v53 = vld [vmem:[#allocation6 + $0xc0] sm:$0xff]  }
 0x2fe   :  { %v577_v58 = vpack.c.bf16 %v570_v55, %v569_v54  ;;  %v2903_v54 = vld [vmem:[#allocation6 + $0xc8] sm:$0xff]   ;;  %v2904_v55 = vld [vmem:[#allocation6 + $0xd0] sm:$0xff]  }
 0x300   :  { %2540 = vmatprep.mubr.bf16.mxu0 %v577_v58  ;;  %v2906_v58 = vld [vmem:[#allocation6 + $0xe0] sm:$0xff]  }
 0x301   :  { %2541 = vmatmul.mubr.bf16.vlgmr.msra.gmra.mrb[16].mxu0 %v578_v57  ;;  %v2905_v57 = vld [vmem:[#allocation6 + $0xd8] sm:$0xff]  }
 0x302   :  { %2565 = vmatpush3.bf16.msra.mxu0 %v2894_v12  ;;  %v2909_v12 = vld [vmem:[#allocation6 + $0xf8] sm:$0xff]  }
 0x303   :  { %2566 = vmatprep.subr.bf16.mxu0 %v2895_v13 }
 0x306   :  { %v2522_v59 = vpop.f32.mrb[12].mxu1  ;;  %2567 = vmatpush3.bf16.msra.mxu0 %v2895_v13  ;;  %v2267_v13 = vld [vmem:[%s3660_s3 + $0x2] ss:$0 sm:$0xff] }
 0x307   :  { %v563_v60 = vadd.f32 %v2522_v59, %v2243_v42  ;;  %v554_v61 = vpop.f32.mrb[13].mxu1  ;;  %2568 = vmatprep.subr.bf16.mxu0 %v2896_v14  ;;  %v2907_v59 = vld [vmem:[#allocation6 + $0xe8] sm:$0xff]  }
 0x308   :  { %v555_v62 = vadd.f32 %v2243_v42, %v554_v61  ;;  %v2523_v63 = vpop.f32.mrb[14].mxu1 }
 0x309   :  { %v566_v0 = vadd.f32 %v2523_v63, %v2243_v42  ;;  %v557_v1 = vpop.f32.mrb[15].mxu1  ;;  %v575_v5 = vmax.f32 %v563_v60, 0.0 }
 0x30a   :  { %v558_v2 = vadd.f32 %v2243_v42, %v557_v1  ;;  %v573_v7 = vmax.f32 %v555_v62, 0.0  ;;  %2569 = vmatpush3.bf16.msra.mxu0 %v2896_v14 }
 0x30b   :  { %v576_v6 = vmax.f32 %v566_v0, 0.0  ;;  %2570 = vmatprep.subr.bf16.mxu0 %v2897_v15 }
 0x30c   :  { %v574_v8 = vmax.f32 %v558_v2, 0.0 }
 0x30d   :  { %v580_v9 = vpack.c.bf16 %v576_v6, %v575_v5 }
 0x30e   :  { %v579_v11 = vpack.c.bf16 %v574_v8, %v573_v7  ;;  %2571 = vmatpush3.bf16.msra.mxu0 %v2897_v15 }
 0x30f   :  { %2572 = vmatprep.subr.bf16.mxu0 %v2898_v17 }
 0x310   :  { %2544 = vmatprep.mubr.bf16.mxu0 %v579_v11  ;;  %v2908_v11 = vld [vmem:[#allocation6 + $0xf0] sm:$0xff]  }
 0x311   :  { %2545 = vmatmul.mubr.bf16.gmra.mrb[20].mxu0 %v580_v9 }
 0x312   :  { %2573 = vmatpush3.bf16.msra.mxu0 %v2898_v17 }
 0x313   :  { %2574 = vmatprep.subr.bf16.mxu0 %v2899_v18 }
 0x316   :  { %2575 = vmatpush3.bf16.msra.mxu0 %v2899_v18 }
 0x317   :  { %2576 = vmatprep.subr.bf16.mxu0 %v2900_v19 }
 0x31a   :  { %2577 = vmatpush3.bf16.msra.mxu0 %v2900_v19 }
 0x31b   :  { %2578 = vmatprep.subr.bf16.mxu0 %v2901_v52 }
 0x31e   :  { %2579 = vmatpush3.bf16.msra.mxu0 %v2901_v52 }
 0x3d4   :  { %v2542_v21 = vpop.f32.mrb[16].mxu0 }
 0x3d5   :  { %v697_v22 = vadd.f32 %v2542_v21, %v2253_v20  ;;  %v688_v23 = vpop.f32.mrb[17].mxu0 }
 0x3d6   :  { %v689_v24 = vadd.f32 %v2253_v20, %v688_v23  ;;  %v2543_v25 = vpop.f32.mrb[18].mxu0 }
 0x3d7   :  { %v700_v26 = vadd.f32 %v2543_v25, %v2253_v20  ;;  %v691_v27 = vpop.f32.mrb[19].mxu0  ;;  %v721_v29 = vmax.f32 %v697_v22, 0.0 }
 0x3d8   :  { %v692_v28 = vadd.f32 %v2253_v20, %v691_v27  ;;  %v719_v31 = vmax.f32 %v689_v24, 0.0 }
 0x3d9   :  { %v722_v30 = vmax.f32 %v700_v26, 0.0 }
 0x3da   :  { %v720_v32 = vmax.f32 %v692_v28, 0.0 }
 0x3db   :  { %v728_v33 = vpack.c.bf16 %v722_v30, %v721_v29 }
 0x3dc   :  { %v727_v34 = vpack.c.bf16 %v720_v32, %v719_v31 }
 0x3de   :  { %2548 = vmatprep.subr.bf16.mxu1 %v727_v34 }
 0x3df   :  { %2549 = vmatpush3.bf16.msra.mxu1 %v727_v34 }
 0x3e0   :  { %2550 = vmatprep.subr.bf16.mxu1 %v728_v33 }
 0x3e3   :  { %2551 = vmatpush3.bf16.msra.mxu1 %v728_v33 }
 0x3e4   :  { %v2546_v35 = vpop.f32.mrb[20].mxu0 }
 0x3e5   :  { %v713_v36 = vadd.f32 %v2546_v35, %v2253_v20  ;;  %v704_v39 = vpop.f32.mrb[21].mxu0 }
 0x3e6   :  { %v705_v40 = vadd.f32 %v2253_v20, %v704_v39  ;;  %v2547_v41 = vpop.f32.mrb[22].mxu0 }
 0x3e7   :  { %v716_v42 = vadd.f32 %v2547_v41, %v2253_v20  ;;  %v707_v43 = vpop.f32.mrb[23].mxu0  ;;  %v725_v45 = vmax.f32 %v713_v36, 0.0 }
 0x3e8   :  { %v708_v44 = vadd.f32 %v2253_v20, %v707_v43  ;;  %v723_v48 = vmax.f32 %v705_v40, 0.0 }
 0x3e9   :  { %v726_v46 = vmax.f32 %v716_v42, 0.0 }
 0x3ea   :  { %v724_v49 = vmax.f32 %v708_v44, 0.0 }
 0x3eb   :  { %v730_v50 = vpack.c.bf16 %v726_v46, %v725_v45  ;;  %v2277_v45 = vld [vmem:[%s3660_s3 + $0x3] ss:$0 sm:$0xff] }
 0x3ec   :  { %v729_v51 = vpack.c.bf16 %v724_v49, %v723_v48 }
 0x3ee   :  { %2552 = vmatprep.subr.bf16.mxu1 %v729_v51 }
 0x3ef   :  { %2553 = vmatpush3.bf16.msra.mxu1 %v729_v51 }
 0x3f0   :  { %2554 = vmatprep.subr.bf16.mxu1 %v730_v50 }
 0x3f3   :  { %2555 = vmatpush3.bf16.msra.mxu1 %v730_v50 }
 0x3f4   :  { %2588 = vmatprep.subr.bf16.mxu1 %v2902_v53 }
 0x3f6   :  { %2557 = vmatmul.mubr.msk.bf16.vlgmr.msra.gmra.mrb[16].mxu1 %vm351_vm2, %v3373_v56 }
 0x3f7   :  { %2560 = vmatprep.mubr.msk.bf16.mxu1 %vm351_vm2, %v3383_v4  ;;  %2589 = vmatpush3.bf16.msra.mxu1 %v2902_v53 }
 0x3f8   :  { %2590 = vmatprep.subr.bf16.mxu1 %v2903_v54 }
 0x3fb   :  { %2591 = vmatpush3.bf16.msra.mxu1 %v2903_v54 }
 0x3fc   :  { %2592 = vmatprep.subr.bf16.mxu1 %v2904_v55 }
 0x3fe   :  { %2561 = vmatmul.mubr.msk.bf16.gmra.mrb[20].mxu1 %vm351_vm2, %v3393_v16 }
 0x3ff   :  { %2593 = vmatpush3.bf16.msra.mxu1 %v2904_v55 }
 0x400   :  { %2594 = vmatprep.subr.bf16.mxu1 %v2905_v57 }
 0x403   :  { %2595 = vmatpush3.bf16.msra.mxu1 %v2905_v57 }
 0x404   :  { %2596 = vmatprep.subr.bf16.mxu1 %v2906_v58 }
 0x407   :  { %2597 = vmatpush3.bf16.msra.mxu1 %v2906_v58 }
 0x408   :  { %2598 = vmatprep.subr.bf16.mxu1 %v2907_v59 }
 0x40b   :  { %2599 = vmatpush3.bf16.msra.mxu1 %v2907_v59 }
 0x40c   :  { %2600 = vmatprep.subr.bf16.mxu1 %v2908_v11 }
 0x40f   :  { %2601 = vmatpush3.bf16.msra.mxu1 %v2908_v11 }
 0x410   :  { %2602 = vmatprep.subr.bf16.mxu1 %v2909_v12 }
 0x413   :  { %2603 = vmatpush3.bf16.msra.mxu1 %v2909_v12 }
 0x4c9   :  { %v2558_v60 = vpop.f32.mrb[16].mxu1 }
 0x4ca   :  { %v765_v61 = vpop.f32.mrb[17].mxu1 }
 0x4cb   :  { %v2559_v62 = vpop.f32.mrb[18].mxu1 }
 0x4cc   :  { %v797_v63 = vpack.c.bf16 %v2559_v62, %v2558_v60  ;;  %v768_v0 = vpop.f32.mrb[19].mxu1 }
 0x4cd   :  { %v796_v1 = vpack.c.bf16 %v768_v0, %v765_v61 }
 0x4cf   :  { %2580 = vmatprep.mubr.bf16.mxu0 %v796_v1 }
 0x4d0   :  { %2581 = vmatmul.mubr.bf16.vlgmr.msra.gmra.mrb[24].mxu0 %v797_v63 }
 0x4d1   :  { %v2562_v2 = vpop.f32.mrb[20].mxu1 }
 0x4d2   :  { %v781_v5 = vpop.f32.mrb[21].mxu1 }
 0x4d3   :  { %v2563_v6 = vpop.f32.mrb[22].mxu1 }
 0x4d4   :  { %v799_v7 = vpack.c.bf16 %v2563_v6, %v2562_v2  ;;  %v784_v8 = vpop.f32.mrb[23].mxu1 }
 0x4d5   :  { %v798_v9 = vpack.c.bf16 %v784_v8, %v781_v5 }
 0x4d7   :  { %2584 = vmatprep.mubr.bf16.mxu0 %v798_v9 }
 0x4d8   :  { %2585 = vmatmul.mubr.bf16.gmra.mrb[28].mxu0 %v799_v7 }
 0x5a3   :  { %v2582_v14 = vpop.f32.mrb[24].mxu0 }
 0x5a4   :  { %v916_v15 = vadd.f32 %v2582_v14, %v2267_v13  ;;  %v907_v17 = vpop.f32.mrb[25].mxu0  ;;  %v2910_v14 = vld [vmem:[#allocation6 + $0x100] sm:$0xff]  }
 0x5a5   :  { %v908_v18 = vadd.f32 %v2267_v13, %v907_v17  ;;  %v2583_v19 = vpop.f32.mrb[26].mxu0  ;;  %v2912_v17 = vld [vmem:[#allocation6 + $0x110] sm:$0xff]  }
 0x5a6   :  { %v919_v20 = vadd.f32 %v2583_v19, %v2267_v13  ;;  %v910_v21 = vpop.f32.mrb[27].mxu0  ;;  %v940_v23 = vmax.f32 %v916_v15, 0.0  ;;  %v2911_v15 = vld [vmem:[#allocation6 + $0x108] sm:$0xff]   ;;  %v2914_v19 = vld [vmem:[#allocation6 + $0x120] sm:$0xff]  }
 0x5a7   :  { %v911_v22 = vadd.f32 %v2267_v13, %v910_v21  ;;  %v938_v25 = vmax.f32 %v908_v18, 0.0  ;;  %v2913_v18 = vld [vmem:[#allocation6 + $0x118] sm:$0xff]   ;;  %v2918_v21 = vld [vmem:[#allocation6 + $0x140] sm:$0xff]  }
 0x5a8   :  { %v941_v24 = vmax.f32 %v919_v20, 0.0  ;;  %v2915_v20 = vld [vmem:[#allocation6 + $0x128] sm:$0xff]   ;;  %2652 = vmatprep.subr.bf16.mxu0 %v2918_v21 }
 0x5a9   :  { %v939_v26 = vmax.f32 %v911_v22, 0.0  ;;  %v2919_v22 = vld [vmem:[#allocation6 + $0x148] sm:$0xff]   ;;  %2653 = vmatpush3.bf16.msra.mxu0 %v2918_v21 }
 0x5aa   :  { %v947_v27 = vpack.c.bf16 %v941_v24, %v940_v23  ;;  %2654 = vmatprep.subr.bf16.mxu0 %v2919_v22  ;;  %v2921_v23 = vld [vmem:[#allocation6 + $0x158] sm:$0xff]   ;;  %v2922_v24 = vld [vmem:[#allocation6 + $0x160] sm:$0xff]  }
 0x5ab   :  { %v946_v28 = vpack.c.bf16 %v939_v26, %v938_v25  ;;  %v2586_v29 = vpop.f32.mrb[28].mxu0  ;;  %v2923_v25 = vld [vmem:[#allocation6 + $0x168] sm:$0xff]  }
 0x5ac   :  { %v932_v30 = vadd.f32 %v2586_v29, %v2267_v13  ;;  %v923_v31 = vpop.f32.mrb[29].mxu0 }
 0x5ad   :  { %v924_v32 = vadd.f32 %v2267_v13, %v923_v31  ;;  %v2587_v33 = vpop.f32.mrb[30].mxu0  ;;  %2604 = vmatprep.mubr.bf16.mxu1 %v946_v28  ;;  %2655 = vmatpush3.bf16.msra.mxu0 %v2919_v22  ;;  %v2946_v22 = vld [vmem:[%s3661_s4 + $0x64] ss:$8 sps:$4 sm:$0xff]  }
 0x5ae   :  { %v935_v34 = vadd.f32 %v2587_v33, %v2267_v13  ;;  %v926_v35 = vpop.f32.mrb[31].mxu0  ;;  %2605 = vmatmul.mubr.bf16.vlgmr.msra.gmra.mrb[24].mxu1 %v947_v27  ;;  %v944_v39 = vmax.f32 %v932_v30, 0.0 }
 0x5af   :  { %v927_v36 = vadd.f32 %v2267_v13, %v926_v35  ;;  %v942_v41 = vmax.f32 %v924_v32, 0.0 }
 0x5b0   :  { %v945_v40 = vmax.f32 %v935_v34, 0.0 }
 0x5b1   :  { %v943_v42 = vmax.f32 %v927_v36, 0.0 }
 0x5b2   :  { %v949_v43 = vpack.c.bf16 %v945_v40, %v944_v39  ;;  %v2924_v40 = vld [vmem:[#allocation6 + $0x170] sm:$0xff]  }
 0x5b3   :  { %v948_v44 = vpack.c.bf16 %v943_v42, %v942_v41  ;;  %v2925_v41 = vld [vmem:[#allocation6 + $0x178] sm:$0xff]  }
 0x5b4   :  { %v2926_v42 = vld [vmem:[%s3661_s4] ss:$8 sps:$4 sm:$0xff]  }
 0x5b5   :  { %2608 = vmatprep.mubr.bf16.mxu1 %v948_v44  ;;  %v2931_v44 = vld [vmem:[%s3661_s4 + $0x14] ss:$8 sps:$4 sm:$0xff]  }
 0x5b6   :  { %2609 = vmatmul.mubr.bf16.gmra.mrb[28].mxu1 %v949_v43  ;;  %v2928_v43 = vld [vmem:[%s3661_s4 + $0x4] ss:$8 sps:$4 sm:$0xff]  }
 0x5b7   :  { %2620 = vmatprep.mubr.msk.bf16.mxu1 %vm351_vm2, %v3363_v47 }
 0x681   :  { %v2606_v46 = vpop.f32.mrb[24].mxu1 }
 0x682   :  { %v1066_v48 = vadd.f32 %v2606_v46, %v2277_v45  ;;  %v1057_v49 = vpop.f32.mrb[25].mxu1  ;;  %v2934_v46 = vld [vmem:[%s3661_s4 + $0x24] ss:$8 sps:$4 sm:$0xff]  }
 0x683   :  { %v1058_v50 = vadd.f32 %v2277_v45, %v1057_v49  ;;  %v2607_v51 = vpop.f32.mrb[26].mxu1  ;;  %v2937_v49 = vld [vmem:[%s3661_s4 + $0x34] ss:$8 sps:$4 sm:$0xff]  }
 0x684   :  { %v1069_v52 = vadd.f32 %v2607_v51, %v2277_v45  ;;  %v1060_v53 = vpop.f32.mrb[27].mxu1  ;;  %v1090_v55 = vmax.f32 %v1066_v48, 0.0  ;;  %v2932_v48 = vld [vmem:[%s3661_s4 + $0x20] ss:$8 sps:$4 sm:$0xff]   ;;  %v2940_v51 = vld [vmem:[%s3661_s4 + $0x44] ss:$8 sps:$4 sm:$0xff]  }
 0x685   :  { %v1061_v54 = vadd.f32 %v2277_v45, %v1060_v53  ;;  %v1088_v58 = vmax.f32 %v1058_v50, 0.0  ;;  %v2935_v50 = vld [vmem:[%s3661_s4 + $0x30] ss:$8 sps:$4 sm:$0xff]   ;;  %v2943_v53 = vld [vmem:[%s3661_s4 + $0x54] ss:$8 sps:$4 sm:$0xff]  }
 0x686   :  { %v1091_v57 = vmax.f32 %v1069_v52, 0.0  ;;  %v2938_v52 = vld [vmem:[%s3661_s4 + $0x40] ss:$8 sps:$4 sm:$0xff]  }
 0x687   :  { %v1089_v59 = vmax.f32 %v1061_v54, 0.0  ;;  %v2941_v54 = vld [vmem:[%s3661_s4 + $0x50] ss:$8 sps:$4 sm:$0xff]  }
 0x688   :  { %v1097_v60 = vpack.c.bf16 %v1091_v57, %v1090_v55  ;;  %v2291_v55 = vld [vmem:[%s3660_s3 + $0x4] ss:$0 sm:$0xff] }
 0x689   :  { %v1096_v61 = vpack.c.bf16 %v1089_v59, %v1088_v58  ;;  %v2610_v62 = vpop.f32.mrb[28].mxu1 }
 0x68a   :  { %v1082_v47 = vadd.f32 %v2610_v62, %v2277_v45  ;;  %v1073_v63 = vpop.f32.mrb[29].mxu1 }
 0x68b   :  { %v1074_v0 = vadd.f32 %v2277_v45, %v1073_v63  ;;  %v2611_v1 = vpop.f32.mrb[30].mxu1  ;;  %2612 = vmatprep.subr.bf16.mxu1 %v1096_v61 }
 0x68c   :  { %v1085_v2 = vadd.f32 %v2611_v1, %v2277_v45  ;;  %v1076_v5 = vpop.f32.mrb[31].mxu1  ;;  %2613 = vmatpush3.bf16.msra.mxu1 %v1096_v61  ;;  %v1094_v7 = vmax.f32 %v1082_v47, 0.0 }
 0x68d   :  { %v1077_v6 = vadd.f32 %v2277_v45, %v1076_v5  ;;  %2614 = vmatprep.subr.bf16.mxu1 %v1097_v60  ;;  %v1092_v9 = vmax.f32 %v1074_v0, 0.0  ;;  %v2929_v45 = vld [vmem:[%s3661_s4 + $0x10] ss:$8 sps:$4 sm:$0xff]  }
 0x68e   :  { %v1095_v8 = vmax.f32 %v1085_v2, 0.0 }
 0x68f   :  { %v1093_v11 = vmax.f32 %v1077_v6, 0.0 }
 0x690   :  { %v1099_v12 = vpack.c.bf16 %v1095_v8, %v1094_v7  ;;  %2615 = vmatpush3.bf16.msra.mxu1 %v1097_v60 }
 0x691   :  { %v1098_v13 = vpack.c.bf16 %v1093_v11, %v1092_v9 }
 0x693   :  { %2616 = vmatprep.subr.bf16.mxu1 %v1098_v13 }
 0x694   :  { %2617 = vmatpush3.bf16.msra.mxu1 %v1098_v13 }
 0x695   :  { %2618 = vmatprep.subr.bf16.mxu1 %v1099_v12 }
 0x698   :  { %2619 = vmatpush3.bf16.msra.mxu1 %v1099_v12 }
 0x699   :  { %2628 = vmatprep.subr.bf16.mxu1 %v2910_v14 }
 0x69b   :  { %2621 = vmatmul.mubr.msk.bf16.vlgmr.msra.gmra.mrb[32].mxu1 %vm351_vm2, %v3373_v56  ;;  %v2916_v56 = vld [vmem:[#allocation6 + $0x130] sm:$0xff]  }
 0x69c   :  { %2624 = vmatprep.mubr.msk.bf16.mxu1 %vm351_vm2, %v3383_v4  ;;  %2629 = vmatpush3.bf16.msra.mxu1 %v2910_v14  ;;  %v2917_v4 = vld [vmem:[#allocation6 + $0x138] sm:$0xff]  }
 0x69d   :  { %2630 = vmatprep.subr.bf16.mxu1 %v2911_v15 }
 0x6a0   :  { %2631 = vmatpush3.bf16.msra.mxu1 %v2911_v15 }
 0x6a1   :  { %2632 = vmatprep.subr.bf16.mxu1 %v2912_v17 }
 0x6a3   :  { %2625 = vmatmul.mubr.msk.bf16.gmra.mrb[36].mxu1 %vm351_vm2, %v3393_v16  ;;  %v2920_v16 = vld [vmem:[#allocation6 + $0x150] sm:$0xff]  }
 0x6a4   :  { %2633 = vmatpush3.bf16.msra.mxu1 %v2912_v17  ;;  %2656 = vmatprep.subr.bf16.mxu0 %v2920_v16 }
 0x6a5   :  { %2634 = vmatprep.subr.bf16.mxu1 %v2913_v18  ;;  %2657 = vmatpush3.bf16.msra.mxu0 %v2920_v16  ;;  %v2944_v16 = vld [vmem:[%s3661_s4 + $0x60] ss:$8 sps:$4 sm:$0xff]  }
 0x6a6   :  { %2658 = vmatprep.subr.bf16.mxu0 %v2921_v23 }
 0x6a8   :  { %2635 = vmatpush3.bf16.msra.mxu1 %v2913_v18 }
 0x6a9   :  { %2636 = vmatprep.subr.bf16.mxu1 %v2914_v19  ;;  %2659 = vmatpush3.bf16.msra.mxu0 %v2921_v23  ;;  %v2949_v23 = vld [vmem:[%s3661_s4 + $0x74] ss:$8 sps:$4 sm:$0xff]  }
 0x6aa   :  { %2660 = vmatprep.subr.bf16.mxu0 %v2922_v24 }
 0x6ac   :  { %2637 = vmatpush3.bf16.msra.mxu1 %v2914_v19 }
 0x6ad   :  { %2638 = vmatprep.subr.bf16.mxu1 %v2915_v20  ;;  %2661 = vmatpush3.bf16.msra.mxu0 %v2922_v24  ;;  %v2947_v24 = vld [vmem:[%s3661_s4 + $0x70] ss:$8 sps:$4 sm:$0xff]  }
 0x6ae   :  { %2662 = vmatprep.subr.bf16.mxu0 %v2923_v25 }
 0x6b0   :  { %2639 = vmatpush3.bf16.msra.mxu1 %v2915_v20 }
 0x6b1   :  { %2640 = vmatprep.subr.bf16.mxu1 %v2916_v56  ;;  %2663 = vmatpush3.bf16.msra.mxu0 %v2923_v25  ;;  %v3155_v25 = vmov 0  }
 0x6b2   :  { %2664 = vmatprep.subr.bf16.mxu0 %v2924_v40  ;;  %2877 = vset.pattern.permute.xlu0 %v3155_v25 }
 0x6b4   :  { %2641 = vmatpush3.bf16.msra.mxu1 %v2916_v56 }
 0x6b5   :  { %2642 = vmatprep.subr.bf16.mxu1 %v2917_v4  ;;  %2665 = vmatpush3.bf16.msra.mxu0 %v2924_v40 }
 0x6b6   :  { %2666 = vmatprep.subr.bf16.mxu0 %v2925_v41 }
 0x6b8   :  { %2643 = vmatpush3.bf16.msra.mxu1 %v2917_v4 }
 0x6b9   :  { %2667 = vmatpush3.bf16.msra.mxu0 %v2925_v41  ;;  %1577 = vmatprep.subr.bf16.mxu1 %v2928_v43 }
 0x76e   :  { %v2622_v26 = vpop.f32.mrb[32].mxu1 }
 0x76f   :  { %v1134_v27 = vpop.f32.mrb[33].mxu1 }
 0x770   :  { %v2623_v28 = vpop.f32.mrb[34].mxu1 }
 0x771   :  { %v1166_v29 = vpack.c.bf16 %v2623_v28, %v2622_v26  ;;  %v1137_v30 = vpop.f32.mrb[35].mxu1  ;;  %v2301_v26 = vld [vmem:[%s3660_s3 + $0x5] ss:$0 sm:$0xff]  ;;  %s3076_s3 = scalar_lea.vmem %s2141_s1, 32 }
 0x772   :  { %v1165_v31 = vpack.c.bf16 %v1137_v30, %v1134_v27  ;;  %p3078_p12 = scmp.lt.s32.totalorder %s3076_s3, %s3072_s21 }
 0x774   :  { %2644 = vmatprep.mubr.bf16.mxu1 %v1165_v31  ;;  %p3079_p13 = por %p3078_p12, %p3077_p11 }
 0x775   :  { %2645 = vmatmul.mubr.bf16.vlgmr.msra.gmra.mrb[40].mxu1 %v1166_v29 }
 0x776   :  { %v2626_v32 = vpop.f32.mrb[36].mxu1  ;;  %1578 = vmatpush1.bf16.msra.mxu1 %v2926_v42  ;;  %p3080_p0 = pnand %p3079_p13, %p3073_p10 }
 0x777   :  { %v1150_v33 = vpop.f32.mrb[37].mxu1  ;;  %1579 = vmatprep.subr.bf16.mxu1 %v2931_v44 }
 0x778   :  { %v2627_v34 = vpop.f32.mrb[38].mxu1 }
 0x779   :  { %v1168_v35 = vpack.c.bf16 %v2627_v34, %v2626_v32  ;;  %v1153_v36 = vpop.f32.mrb[39].mxu1 }
 0x77a   :  { %v1167_v39 = vpack.c.bf16 %v1153_v36, %v1150_v33  ;;  %1580 = vmatpush1.bf16.msra.mxu1 %v2929_v45 }
 0x77b   :  { %1581 = vmatprep.subr.bf16.mxu1 %v2934_v46 }
 0x77c   :  { %2648 = vmatprep.mubr.bf16.mxu1 %v1167_v39 }
 0x77d   :  { %2649 = vmatmul.mubr.bf16.gmra.mrb[44].mxu1 %v1168_v35 }
 0x77e   :  { %1582 = vmatpush1.bf16.msra.mxu1 %v2932_v48  ;;  %1609 = vmatprep.mubr.bf16.mxu1 %v3155_v25 }
 0x77f   :  { %1583 = vmatprep.subr.bf16.mxu1 %v2937_v49 }
 0x782   :  { %1584 = vmatpush1.bf16.msra.mxu1 %v2935_v50 }
 0x783   :  { %1585 = vmatprep.subr.bf16.mxu1 %v2940_v51 }
 0x786   :  { %1586 = vmatpush1.bf16.msra.mxu1 %v2938_v52 }
 0x787   :  { %1587 = vmatprep.subr.bf16.mxu1 %v2943_v53 }
 0x78a   :  { %1588 = vmatpush1.bf16.msra.mxu1 %v2941_v54 }
 0x78b   :  { %1589 = vmatprep.subr.bf16.mxu1 %v2946_v22 }
 0x78e   :  { %1590 = vmatpush1.bf16.msra.mxu1 %v2944_v16 }
 0x78f   :  { %1591 = vmatprep.subr.bf16.mxu1 %v2949_v23 }
 0x792   :  { %1592 = vmatpush1.bf16.msra.mxu1 %v2947_v24 }
 0x848   :  { %v2646_v57 = vpop.f32.mrb[40].mxu1 }
 0x849   :  { %v1285_v58 = vadd.f32 %v2646_v57, %v2291_v55  ;;  %v1276_v59 = vpop.f32.mrb[41].mxu1 }
 0x84a   :  { %v1277_v60 = vadd.f32 %v2291_v55, %v1276_v59  ;;  %v2647_v61 = vpop.f32.mrb[42].mxu1  ;;  %v3156_v59 = vmov 0.0|0.0  }
 0x84b   :  { %v1288_v62 = vadd.f32 %v2647_v61, %v2291_v55  ;;  %v1279_v47 = vpop.f32.mrb[43].mxu1  ;;  %v1309_v0 = vmax.f32 %v1285_v58, 0.0  ;;  %2784 = vmatprep.subr.bf16.mxu0 %v3156_v59  ;;  %2808 = vmatprep.subr.bf16.mxu1 %v3156_v59  ;;  %v1485_v61 = vld [vmem:[%s3662_s5] sm:$0x3] }
 0x84c   :  { %v1280_v63 = vadd.f32 %v2291_v55, %v1279_v47  ;;  %v1307_v2 = vmax.f32 %v1277_v60, 0.0  ;;  %v1715_v60 = vld [vmem:[#allocation2] sm:$0x1] }
 0x84d   :  { %v1310_v1 = vmax.f32 %v1288_v62, 0.0  ;;  %1718 = vperm.xlu0 %2877, %v1715_v60   ;;  %v1494_v62 = vrot.slane %v1485_v61, %v3302_v10 }
 0x84e   :  { %v1308_v5 = vmax.f32 %v1280_v63, 0.0 }
 0x84f   :  { %v1316_v6 = vpack.c.bf16 %v1310_v1, %v1309_v0 }
 0x850   :  { %v1315_v7 = vpack.c.bf16 %v1308_v5, %v1307_v2  ;;  %v2650_v8 = vpop.f32.mrb[44].mxu1 }
 0x851   :  { %v1301_v9 = vadd.f32 %v2650_v8, %v2291_v55  ;;  %v1292_v11 = vpop.f32.mrb[45].mxu1 }
 0x852   :  { %v1293_v12 = vadd.f32 %v2291_v55, %v1292_v11  ;;  %v2651_v13 = vpop.f32.mrb[46].mxu1  ;;  %2668 = vmatprep.mubr.bf16.mxu0 %v1315_v7  ;;  %v3502_v11 = vrot.slane %v1485_v61, %v3285_v3 }
 0x853   :  { %v1304_v14 = vadd.f32 %v2651_v13, %v2291_v55  ;;  %v1295_v15 = vpop.f32.mrb[47].mxu1  ;;  %2669 = vmatmul.mubr.bf16.vlgmr.msra.gmra.mrb[32].mxu0 %v1316_v6  ;;  %v1313_v18 = vmax.f32 %v1301_v9, 0.0 }
 0x854   :  { %v1296_v17 = vadd.f32 %v2291_v55, %v1295_v15  ;;  %v1311_v20 = vmax.f32 %v1293_v12, 0.0 }
 0x855   :  { %v1314_v19 = vmax.f32 %v1304_v14, 0.0 }
 0x856   :  { %v1312_v56 = vmax.f32 %v1296_v17, 0.0 }
 0x857   :  { %v1318_v4 = vpack.c.bf16 %v1314_v19, %v1313_v18 }
 0x858   :  { %v1317_v21 = vpack.c.bf16 %v1312_v56, %v1311_v20 }
 0x85a   :  { %2672 = vmatprep.mubr.bf16.mxu0 %v1317_v21 }
 0x85b   :  { %2673 = vmatmul.mubr.bf16.gmra.mrb[36].mxu0 %v1318_v4 }
 0x85c   :  { %2692 = vmatprep.mubr.msk.f32.mxu0 %vm3157_vm9, %v3154_v38 }
 0x926   :  { %v2670_v27 = vpop.f32.mrb[32].mxu0 }
 0x927   :  { %v1435_v28 = vadd.f32 %v2670_v27, %v2301_v26  ;;  %v1426_v29 = vpop.f32.mrb[33].mxu0 }
 0x928   :  { %v1427_v30 = vadd.f32 %v2301_v26, %v1426_v29  ;;  %v2671_v31 = vpop.f32.mrb[34].mxu0 }
 0x929   :  { %v1438_v32 = vadd.f32 %v2671_v31, %v2301_v26  ;;  %v1429_v33 = vpop.f32.mrb[35].mxu0  ;;  %v1459_v35 = vmax.f32 %v1435_v28, 0.0 }
 0x92a   :  { %v1430_v34 = vadd.f32 %v2301_v26, %v1429_v33  ;;  %v1457_v39 = vmax.f32 %v1427_v30, 0.0 }
 0x92b   :  { %v1460_v36 = vmax.f32 %v1438_v32, 0.0 }
 0x92c   :  { %v1458_v40 = vmax.f32 %v1430_v34, 0.0 }
 0x92d   :  { %v3479_v41 = vpack.c.bf16 %v1460_v36, %v1459_v35 }
 0x92e   :  { %v3481_v42 = vpack.c.bf16 %v1458_v40, %v1457_v39  ;;  %v2674_v43 = vpop.f32.mrb[36].mxu0 }
 0x92f   :  { %v1451_v44 = vadd.f32 %v2674_v43, %v2301_v26  ;;  %v1442_v45 = vpop.f32.mrb[37].mxu0 }
 0x930   :  { %v1443_v46 = vadd.f32 %v2301_v26, %v1442_v45  ;;  %v2675_v48 = vpop.f32.mrb[38].mxu0  ;;  %1610 = vmatmul.mubr.bf16.vlgmr.msra.gmra.mrb[48].mxu1 %v3481_v42 }
 0x931   :  { %v1454_v49 = vadd.f32 %v2675_v48, %v2301_v26  ;;  %v1445_v50 = vpop.f32.mrb[39].mxu0  ;;  %1619 = vmatprep.mubr.bf16.mxu1 %v3155_v25  ;;  %v1463_v52 = vmax.f32 %v1451_v44, 0.0 }
 0x932   :  { %v1446_v51 = vadd.f32 %v2301_v26, %v1445_v50  ;;  %v1461_v54 = vmax.f32 %v1443_v46, 0.0 }
 0x933   :  { %v1464_v53 = vmax.f32 %v1454_v49, 0.0 }
 0x934   :  { %v1462_v55 = vmax.f32 %v1446_v51, 0.0 }
 0x935   :  { %v3484_v57 = vpack.c.bf16 %v1464_v53, %v1463_v52 }
 0x936   :  { %v3486_v58 = vpack.c.bf16 %v1462_v55, %v1461_v54 }
 0x938   :  { %1620 = vmatmul.mubr.bf16.gmra.mrb[52].mxu1 %v3479_v41 }
 0x939   :  { %1629 = vmatprep.mubr.bf16.mxu1 %v3155_v25 }
 0x940   :  { %1630 = vmatmul.mubr.bf16.gmra.mrb[56].mxu1 %v3486_v58 }
 0x941   :  { %1639 = vmatprep.mubr.bf16.mxu1 %v3155_v25 }
 0x948   :  { %1640 = vmatmul.mubr.bf16.gmra.mrb[60].mxu1 %v3484_v57 }
 0x949   :  { %2746 = vmatprep.mubr.msk.f32.mxu1 %vm3157_vm9, %v3154_v38 }
 0xa03   :  { %v1611_v47 = vpop.f32.mrb[48].mxu1 }
 0xa04   :  { %v1613_v63 = vpop.f32.mrb[49].mxu1  ;;  %v1612_v17 = vadd.f32 %v1611_v47, %v3502_v11 }
 0xa05   :  { %v1614_v0 = vadd.f32 %v1613_v63, %v1494_v62  ;;  %v1615_v1 = vpop.f32.mrb[50].mxu1 }
 0xa06   :  { %v1617_v2 = vpop.f32.mrb[51].mxu1  ;;  %v1616_v20 = vadd.f32 %v1615_v1, %v3502_v11 }
 0xa07   :  { %v2326_v5 = vmul.f32 -1.442695, %v1614_v0  ;;  %v1618_v6 = vadd.f32 %v1617_v2, %v1494_v62 }
 0xa09   :  { %2950 = vpow2.f32 %v2326_v5  ;;  %v2327_v7 = vmul.f32 -1.442695, %v1618_v6 }
 0xa0b   :  { %2952 = vpow2.f32 %v2327_v7  ;;  %v1621_v8 = vpop.f32.mrb[52].mxu1 }
 0xa0c   :  { %v1623_v9 = vpop.f32.mrb[53].mxu1  ;;  %v1622_v28 = vadd.f32 %v1621_v8, %v3502_v11 }
 0xa0d   :  { %v1624_v12 = vadd.f32 %v1623_v9, %v1494_v62  ;;  %v1625_v13 = vpop.f32.mrb[54].mxu1 }
 0xa0e   :  { %v1627_v14 = vpop.f32.mrb[55].mxu1  ;;  %v1626_v31 = vadd.f32 %v1625_v13, %v3502_v11 }
 0xa0f   :  { %v2328_v15 = vmul.f32 -1.442695, %v1624_v12  ;;  %v1628_v10 = vadd.f32 %v1627_v14, %v1494_v62 }
 0xa11   :  { %2954 = vpow2.f32 %v2328_v15  ;;  %v2329_v18 = vmul.f32 -1.442695, %v1628_v10 }
 0xa13   :  { %v2951_v19 = vpop.eup %2950  ;;  %2956 = vpow2.f32 %v2329_v18  ;;  %v1631_v56 = vpop.f32.mrb[56].mxu1 }
 0xa14   :  { %v1682_v4 = vadd.f32 1.0, %v2951_v19  ;;  %v1633_v21 = vpop.f32.mrb[57].mxu1  ;;  %2958 = vtanh.f32 %v1612_v17  ;;  %v1632_v50 = vadd.f32 %v1631_v56, %v3502_v11 }
 0xa15   :  { %v2953_v22 = vpop.eup %2952  ;;  %v1634_v16 = vadd.f32 %v1633_v21, %v1494_v62  ;;  %v1635_v23 = vpop.f32.mrb[58].mxu1 }
 0xa16   :  { %2960 = vrcp.f32 %v1682_v4  ;;  %v1683_v24 = vadd.f32 1.0, %v2953_v22  ;;  %v1637_v25 = vpop.f32.mrb[59].mxu1  ;;  %v1636_v55 = vadd.f32 %v1635_v23, %v3502_v11 }
 0xa17   :  { %2962 = vtanh.f32 %v1616_v20  ;;  %v2330_v26 = vmul.f32 -1.442695, %v1634_v16  ;;  %v1638_v27 = vadd.f32 %v1637_v25, %v1494_v62 }
 0xa18   :  { %2964 = vrcp.f32 %v1683_v24 }
 0xa19   :  { %2966 = vpow2.f32 %v2330_v26  ;;  %v2331_v29 = vmul.f32 -1.442695, %v1638_v27  ;;  %v1714_v27 = vld [vmem:[%s3663_s6] sm:$0x1] }
 0xa1b   :  { %v2955_v30 = vpop.eup %2954  ;;  %2968 = vpow2.f32 %v2331_v29  ;;  %v1641_v32 = vpop.f32.mrb[60].mxu1 }
 0xa1c   :  { %v1684_v33 = vadd.f32 1.0, %v2955_v30  ;;  %v1643_v34 = vpop.f32.mrb[61].mxu1  ;;  %2970 = vtanh.f32 %v1622_v28  ;;  %v1642_v5 = vadd.f32 %v1641_v32, %v3502_v11  ;;  %v1719_v28 = vpop.permute.xlu0 %1718 }
 0xa1d   :  { %v2957_v35 = vpop.eup %2956  ;;  %v1644_v36 = vadd.f32 %v1643_v34, %v1494_v62  ;;  %v1645_v39 = vpop.f32.mrb[62].mxu1 }
 0xa1e   :  { %2972 = vrcp.f32 %v1684_v33  ;;  %v1685_v40 = vadd.f32 1.0, %v2957_v35  ;;  %v1647_v43 = vpop.f32.mrb[63].mxu1  ;;  %v2959_v44 = vpop.eup %2958  ;;  %v1646_v9 = vadd.f32 %v1645_v39, %v3502_v11  ;;  %v1883_v39 = vld [vmem:[#allocation8 + $0x10] sm:$0xff] }
 0xa1f   :  { %2974 = vtanh.f32 %v1626_v31  ;;  %v2332_v45 = vmul.f32 -1.442695, %v1644_v36  ;;  %v1648_v46 = vadd.f32 %v1647_v43, %v1494_v62  ;;  %v1882_v36 = vld [vmem:[#allocation8 + $0x8] sm:$0xff]  ;;  %v1884_v43 = vld [vmem:[#allocation8 + $0x18] sm:$0xff] }
 0xa20   :  { %v2961_v48 = vpop.eup %2960  ;;  %2976 = vrcp.f32 %v1685_v40 }
 0xa21   :  { %v2963_v49 = vpop.eup %2962  ;;  %2978 = vpow2.f32 %v2332_v45  ;;  %v2333_v51 = vmul.f32 -1.442695, %v1648_v46  ;;  %v1706_v52 = vmul.f32 %v2961_v48, %v2959_v44  ;;  %v1885_v44 = vld [vmem:[#allocation8 + $0x20] sm:$0xff]  ;;  %v1886_v45 = vld [vmem:[#allocation8 + $0x28] sm:$0xff]  ;;  %v1887_v48 = vld [vmem:[#allocation8 + $0x30] sm:$0xff] }
 0xa22   :  { %v2965_v53 = vpop.eup %2964  ;;  %v2815_v46 = vpack.c.bf16 %v1886_v45, %v1885_v44 }
 0xa23   :  { %v2967_v54 = vpop.eup %2966  ;;  %2980 = vpow2.f32 %v2333_v51  ;;  %v1707_v60 = vmul.f32 %v2965_v53, %v2963_v49  ;;  %v1888_v49 = vld [vmem:[#allocation8 + $0x38] sm:$0xff]  ;;  %v1889_v51 = vld [vmem:[#allocation8 + $0x40] sm:$0xff] }
 0xa24   :  { %v1686_v61 = vadd.f32 1.0, %v2967_v54  ;;  %2982 = vtanh.f32 %v1632_v50  ;;  %v2818_v50 = vpack.c.bf16 %v1888_v49, %v1887_v48  ;;  %v1891_v54 = vld [vmem:[#allocation8 + $0x50] sm:$0xff] }
 0xa25   :  { %v2969_v47 = vpop.eup %2968  ;;  %v2785_v63 = vpack.c.bf16 %v1707_v60, %v1706_v52  ;;  %v1890_v52 = vld [vmem:[#allocation8 + $0x48] sm:$0xff] }
 0xa26   :  { %2984 = vrcp.f32 %v1686_v61  ;;  %v1687_v62 = vadd.f32 1.0, %v2969_v47  ;;  %v2971_v0 = vpop.eup %2970  ;;  %v2821_v53 = vpack.c.bf16 %v1890_v52, %v1889_v51  ;;  %v1893_v61 = vld [vmem:[#allocation8 + $0x60] sm:$0xff]  ;;  %v1894_v47 = vld [vmem:[#allocation8 + $0x68] sm:$0xff] }
 0xa27   :  { %2986 = vtanh.f32 %v1636_v55  ;;  %2786 = vmatpush3.bf16.xpose.msra.mxu0 %v2785_v63  ;;  %v1892_v55 = vld [vmem:[#allocation8 + $0x58] sm:$0xff]  ;;  %v2827_v63 = vpack.c.bf16 %v1894_v47, %v1893_v61 }
 0xa28   :  { %v2973_v1 = vpop.eup %2972  ;;  %2988 = vrcp.f32 %v1687_v62  ;;  %2787 = vmatprep.subr.bf16.mxu0 %v3156_v59  ;;  %v2824_v60 = vpack.c.bf16 %v1892_v55, %v1891_v54  ;;  %v1895_v62 = vld [vmem:[#allocation8 + $0x70] sm:$0xff] }
 0xa29   :  { %v2975_v2 = vpop.eup %2974  ;;  %v1708_v6 = vmul.f32 %v2973_v1, %v2971_v0  ;;  %2990 = vtanh.f32 %v1642_v5  ;;  %v1896_v0 = vld [vmem:[#allocation8 + $0x78] sm:$0xff] }
 0xa2a   :  { %v2977_v7 = vpop.eup %2976  ;;  %v2830_v1 = vpack.c.bf16 %v1896_v0, %v1895_v62 }
 0xa2b   :  { %v2979_v8 = vpop.eup %2978  ;;  %v1709_v12 = vmul.f32 %v2977_v7, %v2975_v2  ;;  %v1969_v7 = vld [vmem:[%s3667_s10] sm:$0xff] }
 0xa2c   :  { %v1688_v13 = vadd.f32 1.0, %v2979_v8  ;;  %v1970_v8 = vld [vmem:[%s3667_s10 + $0x8] sm:$0xff] }
 0xa2d   :  { %v2981_v14 = vpop.eup %2980  ;;  %v2788_v15 = vpack.c.bf16 %v1709_v12, %v1708_v6  ;;  %v2833_v12 = vpack.c.bf16 %v1970_v8, %v1969_v7 }
 0xa2e   :  { %2992 = vrcp.f32 %v1688_v13  ;;  %v1689_v10 = vadd.f32 1.0, %v2981_v14  ;;  %v2983_v17 = vpop.eup %2982  ;;  %v1972_v13 = vld [vmem:[%s3667_s10 + $0x18] sm:$0xff] }
 0xa2f   :  { %2994 = vtanh.f32 %v1646_v9  ;;  %2789 = vmatpush3.bf16.xpose.msra.mxu0 %v2788_v15  ;;  %v1971_v9 = vld [vmem:[%s3667_s10 + $0x10] sm:$0xff]  ;;  %v1974_v15 = vld [vmem:[%s3667_s10 + $0x28] sm:$0xff] }
 0xa30   :  { %v2985_v18 = vpop.eup %2984  ;;  %2996 = vrcp.f32 %v1689_v10  ;;  %2790 = vmatprep.subr.bf16.mxu0 %v3156_v59  ;;  %v2836_v14 = vpack.c.bf16 %v1972_v13, %v1971_v9 }
 0xa31   :  { %v2987_v19 = vpop.eup %2986  ;;  %v1710_v20 = vmul.f32 %v2985_v18, %v2983_v17  ;;  %v1975_v17 = vld [vmem:[%s3667_s10 + $0x30] sm:$0xff]  ;;  %v1976_v18 = vld [vmem:[%s3667_s10 + $0x38] sm:$0xff] }
 0xa32   :  { %v2989_v56 = vpop.eup %2988 }
 0xa33   :  { %v1711_v4 = vmul.f32 %v2989_v56, %v2987_v19  ;;  %v2991_v11 = vpop.eup %2990  ;;  %v2842_v19 = vpack.c.bf16 %v1976_v18, %v1975_v17  ;;  %v1978_v56 = vld [vmem:[%s3667_s10 + $0x48] sm:$0xff] }
 0xa35   :  { %v2791_v21 = vpack.c.bf16 %v1711_v4, %v1710_v20  ;;  %v1977_v20 = vld [vmem:[%s3667_s10 + $0x40] sm:$0xff] }
 0xa36   :  { %v2845_v4 = vpack.c.bf16 %v1978_v56, %v1977_v20 }
 0xa37   :  { %2792 = vmatpush3.bf16.xpose.msra.mxu0 %v2791_v21  ;;  %v1979_v21 = vld [vmem:[%s3667_s10 + $0x50] sm:$0xff] }
 0xa38   :  { %v2993_v22 = vpop.eup %2992  ;;  %2793 = vmatprep.subr.bf16.mxu0 %v3156_v59 }
 0xa39   :  { %v2995_v16 = vpop.eup %2994  ;;  %v1712_v23 = vmul.f32 %v2993_v22, %v2991_v11  ;;  %v1980_v11 = vld [vmem:[%s3667_s10 + $0x58] sm:$0xff] }
 0xa3a   :  { %v2997_v24 = vpop.eup %2996  ;;  %v2848_v22 = vpack.c.bf16 %v1980_v11, %v1979_v21 }
 0xa3b   :  { %v1713_v25 = vmul.f32 %v2997_v24, %v2995_v16  ;;  %v1981_v16 = vld [vmem:[%s3667_s10 + $0x60] sm:$0xff] }
 0xa3d   :  { %v2794_v26 = vpack.c.bf16 %v1713_v25, %v1712_v23  ;;  %v1982_v23 = vld [vmem:[%s3667_s10 + $0x68] sm:$0xff] }
 0xa3e   :  { %v2851_v24 = vpack.c.bf16 %v1982_v23, %v1981_v16 }
 0xa3f   :  { %2795 = vmatpush3.bf16.xpose.msra.mxu0 %v2794_v26 }
 0xa40   :  { %2796 = vmatprep.subr.bf16.mxu0 %v3156_v59 }
 0xa46   :  { %2693 = vmatmul.mubr.f32.vlgmr.msra.gmra.mrb[40].mxu0 %v1714_v27  ;;  %v1983_v27 = vld [vmem:[%s3667_s10 + $0x70] sm:$0xff] }
 0xa47   :  { %2798 = vmatpush3.bf16.msra.mxu0 %v3481_v42  ;;  %2711 = vmatprep.mubr.msk.f32.mxu0 %vm3157_vm9, %v3154_v38  ;;  %v1724_v42 = vrot.slane %v1719_v28, %v3285_v3  ;;  %v2812_v3 = vpack.c.bf16 %v1884_v43, %v1883_v39  ;;  %v1984_v28 = vld [vmem:[%s3667_s10 + $0x78] sm:$0xff] }
 0xa48   :  { %2799 = vmatprep.subr.bf16.mxu0 %v3156_v59 }
 0xa4b   :  { %2801 = vmatpush3.bf16.msra.mxu0 %v3479_v41 }
 0xa4c   :  { %2802 = vmatprep.subr.bf16.mxu0 %v3156_v59 }
 0xa4f   :  { %2804 = vmatpush3.bf16.msra.mxu0 %v3486_v58 }
 0xa50   :  { %2805 = vmatprep.subr.bf16.mxu0 %v3156_v59 }
 0xa53   :  { %2807 = vmatpush3.bf16.msra.mxu0 %v3484_v57  ;;  %v1881_v57 = vld [vmem:[#allocation8] sm:$0xff] }
 0xa54   :  { %2832 = vmatprep.subr.bf16.mxu0 %v3156_v59  ;;  %v2809_v40 = vpack.c.bf16 %v1882_v36, %v1881_v57 }
 0xa56   :  { %2810 = vmatpush3.bf16.msra.mxu1 %v2809_v40 }
 0xa57   :  { %2811 = vmatprep.subr.bf16.mxu1 %v3156_v59 }
 0xa5a   :  { %2813 = vmatpush3.bf16.msra.mxu1 %v2812_v3 }
 0xa5b   :  { %2814 = vmatprep.subr.bf16.mxu1 %v3156_v59 }
 0xa5e   :  { %2816 = vmatpush3.bf16.msra.mxu1 %v2815_v46 }
 0xa5f   :  { %2817 = vmatprep.subr.bf16.mxu1 %v3156_v59 }
 0xa62   :  { %2819 = vmatpush3.bf16.msra.mxu1 %v2818_v50 }
 0xa63   :  { %2820 = vmatprep.subr.bf16.mxu1 %v3156_v59 }
 0xa66   :  { %2822 = vmatpush3.bf16.msra.mxu1 %v2821_v53 }
 0xa67   :  { %2823 = vmatprep.subr.bf16.mxu1 %v3156_v59 }
 0xa6a   :  { %2825 = vmatpush3.bf16.msra.mxu1 %v2824_v60 }
 0xa6b   :  { %2826 = vmatprep.subr.bf16.mxu1 %v3156_v59 }
 0xa6e   :  { %2828 = vmatpush3.bf16.msra.mxu1 %v2827_v63 }
 0xa6f   :  { %2829 = vmatprep.subr.bf16.mxu1 %v3156_v59 }
 0xa72   :  { %2831 = vmatpush3.bf16.msra.mxu1 %v2830_v1 }
 0xb19   :  { %v1791_v29 = vpop.f32.mrb[40].mxu0 }
 0xb1a   :  { %v1792_v30 = vadd.f32 %v1791_v29, %v1724_v42  ;;  %v2694_v31 = vpop.f32.mrb[41].mxu0  ;;  %v2854_v42 = vpack.c.bf16 %v1984_v28, %v1983_v27  ;;  %v1897_v29 = vld [vmem:[%s3666_s9] sm:$0x1]  ;;  %s3158_s9 = smov 127  }
 0xb1c   :  { %v1797_v32 = vsel %vm1795_vm10, %v1792_v30, -inf  ;;  %1796 = vst.msk [vmem:[#allocation12] sm:$0x1] %vm1795_vm10, %v1792_v30 }
 0xb1d   :  { %1798 = vmax.xlane.f32.xlu0 %v1797_v32 }
 0xbaa   :  { %v1799_v41 = vpop.xlane.xlu0 %1798 }
 0xbab   :  { %v1800_v33 = vsub.f32 %v1792_v30, %v1799_v41  ;;  %v1985_v41 = vld [vmem:[%s3668_s11] sm:$0x1]  ;;  %s3160_s11 = smov 125  }
 0xbad   :  { %v1801_v34 = vmul.f32 1.442695, %v1800_v33 }
 0xbaf   :  { %2998 = vpow2.f32 %v1801_v34 }
 0xbb9   :  { %v2999_v58 = vpop.eup %2998 }
 0xbba   :  { %v1803_v35 = vsel %vm1795_vm10, %v2999_v58, 0.0 }
 0xbbb   :  { %1804 = vadd.xlane.f32.xlu1 %v1803_v35 }
 0xc48   :  { %v1805_v2 = vpop.xlane.xlu1 %1804 }
 0xc49   :  { %3000 = vrcp.f32 %v1805_v2 }
 0xc53   :  { %v3001_v5 = vpop.eup %3000 }
 0xc54   :  { %v1807_v6 = vmul.f32 %v3001_v5, %v2999_v58 }
 0xc56   :  { %2712 = vmatmul.mubr.msk.f32.vlgmr.msra.gmra.mrb[42].mxu0 %vm351_vm2, %v1807_v6 }
 0xc57   :  { %2781 = vmatprep.mubr.msk.f32.mxu0 %vm3157_vm9, %v3154_v38  ;;  %2834 = vmatpush3.bf16.msra.mxu0 %v2833_v12  ;;  %v1973_v38 = vld [vmem:[%s3667_s10 + $0x20] sm:$0xff]  ;;  %s3159_s10 = smov 126  }
 0xc58   :  { %2835 = vmatprep.subr.bf16.mxu0 %v3156_v59  ;;  %v2839_v10 = vpack.c.bf16 %v1974_v15, %v1973_v38 }
 0xc5b   :  { %2837 = vmatpush3.bf16.msra.mxu0 %v2836_v14 }
 0xc5c   :  { %2838 = vmatprep.subr.bf16.mxu0 %v3156_v59 }
 0xc5f   :  { %2840 = vmatpush3.bf16.msra.mxu0 %v2839_v10 }
 0xc60   :  { %2841 = vmatprep.subr.bf16.mxu0 %v3156_v59 }
 0xc63   :  { %2843 = vmatpush3.bf16.msra.mxu0 %v2842_v19 }
 0xc64   :  { %2844 = vmatprep.subr.bf16.mxu0 %v3156_v59 }
 0xc67   :  { %2846 = vmatpush3.bf16.msra.mxu0 %v2845_v4 }
 0xc68   :  { %2847 = vmatprep.subr.bf16.mxu0 %v3156_v59 }
 0xc6b   :  { %2849 = vmatpush3.bf16.msra.mxu0 %v2848_v22 }
 0xc6c   :  { %2850 = vmatprep.subr.bf16.mxu0 %v3156_v59 }
 0xc6f   :  { %2852 = vmatpush3.bf16.msra.mxu0 %v2851_v24 }
 0xc70   :  { %2853 = vmatprep.subr.bf16.mxu0 %v3156_v59 }
 0xc73   :  { %2855 = vmatpush3.bf16.msra.mxu0 %v2854_v42 }
 0xd29   :  { %v1877_v25 = vpop.f32.mrb[42].mxu0 }
 0xd2a   :  { %v2713_v26 = vpop.f32.mrb[43].mxu0  ;;  %2747 = vmatmul.mubr.f32.vlgmr.msra.gmra.mrb[64].mxu1 %v1877_v25 }
 0xdfd   :  { %v1964_v30 = vpop.f32.mrb[64].mxu1 }
 0xdfe   :  { %v1965_v31 = vadd.f32 %v1964_v30, %v1897_v29  ;;  %v2748_v59 = vpop.f32.mrb[65].mxu1 }
 0xe00   :  { %v1968_v32 = vmax.f32 %v1965_v31, 0.0 }
 0xe02   :  { %2782 = vmatmul.mubr.f32.vlgmr.msra.gmra.mrb[44].mxu0 %v1968_v32 }
 0xed5   :  { %v2052_v33 = vpop.f32.mrb[44].mxu0 }
 0xed6   :  { %v2053_v34 = vadd.f32 %v2052_v33, %v1985_v41  ;;  %v2783_v58 = vpop.f32.mrb[45].mxu0 }
 0xed8   :  { %v2335_v35 = vmul.f32 -1.442695, %v2053_v34  ;;  %v2102_v57 = vsel %vm2101_vm11, %v2053_v34, -inf }
 0xed9   :  { %2103 = vmax.xlane.f32.xlu1 %v2102_v57 }
 0xeda   :  { %3002 = vpow2.f32 %v2335_v35 }
 0xee4   :  { %v3003_v36 = vpop.eup %3002 }
 0xee5   :  { %v2059_v39 = vadd.f32 1.0, %v3003_v36 }
 0xee7   :  { %3004 = vrcp.f32 %v2059_v39 }
 0xef1   :  { %v3602_v40 = vpop.eup %3004 }
 0xef2   :  { %v2062_v43 = vsub.f32 1.0, %v3602_v40 }
 0xef4   :  { %2064 = vrot.lane.b32.xlu1 %v2062_v43, %s3158_s9 }
 0xef8   :  { %2068 = vrot.lane.b32.xlu1 %v2062_v43, %s3159_s10 }
 0xf66   :  { %v2104_v3 = vpop.xlane.xlu1 %2103 }
 0xf67   :  { %vm2105_vm12 = vcmp.eq.f32.partialorder %v2053_v34, %v2104_v3 }
 0xf68   :  { %v2106_v44 = vsel %vm2105_vm12, %v3355_v37, 4 }
 0xf69   :  { %v2107_v45 = vsel %vm2101_vm11, %v2106_v44, 2147483647 }
 0xf6a   :  { %v2109_v46 = vshra.s32 %v2107_v45, 16  ;;  %v2065_v49 = vpop.permute.xlu1 %2064  ;;  %v2108_v52 = vand.u32 65535, %v2107_v45 }
 0xf6b   :  { %v2067_v50 = vmul.f32 %v2065_v49, %v2062_v43 }
 0xf6c   :  { %v2111_v48 = vcvt.s32.f32 %v2109_v46  ;;  %v2110_v54 = vcvt.s32.f32 %v2108_v52 }
 0xf6e   :  { %2112 = vmin.xlane.f32.xlu1 %v2111_v48  ;;  %v2069_v51 = vpop.permute.xlu1 %2068 }
 0xf6f   :  { %v2071_v60 = vmul.f32 %v2069_v51, %v2067_v50 }
 0xf7f   :  { %2072 = vrot.lane.b32.xlu1 %v2062_v43, %s3160_s11 }
 0xf83   :  { %2077 = vrot.lane.b32.xlu1 %v2067_v50, %s3161_s15 }
 0xffb   :  { %v2113_v53 = vpop.xlane.xlu1 %2112 }
 0xffc   :  { %vm2114_vm13 = vcmp.eq.f32.partialorder %v2111_v48, %v2113_v53  ;;  %v2119_v47 = vcvt.f32.s32 %v2113_v53 }
 0xffd   :  { %v2115_v55 = vsel %vm2114_vm13, %v2110_v54, inf }
 0xffe   :  { %2116 = vmin.xlane.f32.xlu0 %v2115_v55  ;;  %v2120_v62 = vshll.u32 %v2119_v47, 16 }
 0xfff   :  { %v2073_v37 = vpop.permute.xlu1 %2072 }
0x1000   :  { %v2075_v61 = vmul.f32 %v2073_v37, %v2071_v60 }
0x1002   :  { %2085 = vrot.lane.b32.xlu1 %v2075_v61, %s3162_s17 }
0x1003   :  { %v2078_v0 = vpop.permute.xlu1 %2077 }
0x1004   :  { %v2089_v5 = vsel %vm2088_vm14, %v2062_v43, %v2078_v0 }
0x1014   :  { %2081 = vrot.lane.b32.xlu0 %v2071_v60, %s3163_s18 }
0x1074   :  { %v2086_v7 = vpop.permute.xlu1 %2085 }
0x108b   :  { %v2117_v63 = vpop.xlane.xlu0 %2116 }
0x108c   :  { %v2118_v1 = vcvt.f32.s32 %v2117_v63 }
0x108e   :  { %v2121_v2 = vadd.s32 %v2120_v62, %v2118_v1 }
0x108f   :  { %v2082_v6 = vpop.permute.xlu0 %2081 }
0x1090   :  { %v2091_v8 = vsel %vm2090_vm15, %v2089_v5, %v2082_v6  ;;  %2123 = vst.msk [vmem:[#allocation10] sm:$0x1] %vm2122_vm0, %v2121_v2 }
0x1091   :  { %v2093_v9 = vsel %vm2092_vm1, %v2091_v8, %v2086_v7 }
0x1092   :  { %3083 = shalt.err (!%p3080_p0)
}
0x1093   :  { %s3084_s22 = scalar_lea.hbm %s3670_s13, 16 }
0x1094   :  { %p3085_p1 = scmp.ne.s32.totalorder %s3670_s13, %s3084_s22  ;;  %p3088_p2 = scmp.lt.u32.totalorder %s3084_s22, %s3670_s13 }
0x1096   :  { %p3090_p3 = pnand %p3088_p2, %p3085_p1 }
0x1098   :  { %3093 = shalt.err (!%p3090_p3)
}
0x1099   :  { %2143 = dma.vmem_to_hbm [thread:$0]  %s2141_s1, 16, %s3670_s13, [#allocation11]   ;;  %vm2097_vm2 = vcmask 1040384   ;;  %v2095_v12 = vrot.slane %v2093_v9, 7  ;;  %vm2099_vm3 = vcmask 25600  }
0x109a   :  { %s3094_s25 = scalar_lea.vmem %s3607_s8, 16  ;;  %s3098_s26 = scalar_lea.vmem %s3607_s8, 32 }
0x109b   :  { %p3095_p4 = scmp.ne.s32.totalorder %s3607_s8, %s3094_s25  ;;  %p3099_p5 = scmp.lt.s32.totalorder %s3607_s8, %s3607_s8 }
0x109c   :  { %p3100_p6 = scmp.lt.s32.totalorder %s3098_s26, %s3094_s25 }
0x109e   :  { %p3101_p7 = por %p3100_p6, %p3099_p5 }
0x10a0   :  { %p3102_p8 = pnand %p3101_p7, %p3095_p4 }
0x10a2   :  { %3105 = shalt.err (!%p3102_p8)
}
0x10a3   :  { %s3106_s30 = scalar_lea.hbm %s3671_s14, 16 }
0x10a4   :  { %p3107_p9 = scmp.ne.s32.totalorder %s3671_s14, %s3106_s30  ;;  %p3110_p10 = scmp.lt.u32.totalorder %s3106_s30, %s3671_s14 }
0x10a6   :  { %p3112_p11 = pnand %p3110_p10, %p3107_p9 }
0x10a8   :  { %3115 = shalt.err (!%p3112_p11)
}
0x10a9   :  { %2153 = dma.vmem_to_hbm [thread:$0]  %s3607_s8, 16, %s3671_s14, [#allocation11]   ;;  %v2098_v13 = vsel %vm2097_vm2, %v3602_v40, %v2095_v12 }
0x10aa   :  { %2100 = vst.msk [vmem:[#allocation9] sm:$0x3] %vm2099_vm3, %v2098_v13  ;;  %s3116_s18 = scalar_lea.vmem %s2131_s0, 32  ;;  %p3121_p13 = scmp.lt.s32.totalorder %s2131_s0, %s2131_s0 }
0x10ab   :  { %p3117_p12 = scmp.ne.s32.totalorder %s2131_s0, %s3116_s18  ;;  %p3122_p0 = scmp.lt.s32.totalorder %s3116_s18, %s3116_s18 }
0x10ad   :  { %p3123_p1 = por %p3122_p0, %p3121_p13 }
0x10af   :  { %p3124_p2 = pnand %p3123_p1, %p3117_p12 }
0x10b1   :  { %3127 = shalt.err (!%p3124_p2)
}
0x10b2   :  { %s3128_s29 = scalar_lea.hbm %s3669_s12, 32 }
0x10b3   :  { %p3129_p3 = scmp.ne.s32.totalorder %s3669_s12, %s3128_s29  ;;  %p3132_p4 = scmp.lt.u32.totalorder %s3128_s29, %s3669_s12 }
0x10b5   :  { %p3134_p5 = pnand %p3132_p4, %p3129_p3 }
0x10b7   :  { %3137 = shalt.err (!%p3134_p5)
}
0x10b8   :  { %2133 = dma.vmem_to_hbm [thread:$0]  %s2131_s0, 32, %s3669_s12, [#allocation5]  }
0x10b9   :  { %3142 = dma.done.wait [#allocation5], 32  }
0x10ba   :  { %3143 = vsyncadd [#allocation5], 4294967264 }
0x10bb   :  { %3144 = dma.done.wait [#allocation11], 32  }
0x10bc   :  { %3145 = vsyncadd [#allocation11], 4294967264 }
0x10bd   :  { %2163 = vsyncpa [#allocation4], 1 }
0x10be   :  { %2164 = vsyncpa [#allocation7], 1 }
0x10bf   :  { %2165 = vsyncpa [#allocation5], 1 }
0x10c0   :  { %2166 = vsyncpa [#allocation11], 1 }

</bundles_post_ra>
